<compile_context>
chip_gen: v7x
topology: tpu7x:2x2x1
jax: 0.10.0
libtpu: 0.0.40
codegen_flags: <defaults>
</compile_context>

<pallas_src>
import numpy as np
import jax
import jax.numpy as jnp
from jax.experimental import pallas as pl
from jax.experimental.pallas import tpu as pltpu


def cluster_gcn_kernel(kmap_ref, nval_ref, a_ref, xw_ref, xp_ref, b_ref, m_ref, o_ref):
    i = pl.program_id(0)   # output row block
    k = pl.program_id(1)   # contraction step (indirected through kmap)

    @pl.when(k == 0)
    def _init():
        o_ref[...] = jnp.zeros_like(o_ref)

    # Only accumulate on valid contraction steps for this row block; invalid
    # steps repeat the previous block index (no DMA) and are skipped here.
    @pl.when(k < nval_ref[i])
    def _accumulate():
        o_ref[...] += jnp.dot(a_ref[...], xw_ref[...],
                              preferred_element_type=jnp.float32)

    @pl.when(k == pl.num_programs(1) - 1)
    def _finalize():
        out = o_ref[...] + b_ref[...]
        # m_ref is (tm, 1); broadcasts over the lane-dense channel dim.
        # Passthrough rows use the exact f32 original features.
        o_ref[...] = jnp.where(m_ref[...] > 0.5, out, xp_ref[...])


def cluster_gcn_forward(A_norm, X, W, b, node_mask, cluster_sorted,
                        *, tm=256, tk=256, lane=128):
    """A_norm: (N, N) f32 block-diagonal normalized adjacency over nodes sorted
       by cluster, A_norm[target, source].  X: (N, C) in the same node order,
       W: (C, C), b: (1, C) or (C,), node_mask: (N,) 1.0 = node's cluster has
       >=1 intra-cluster edge, cluster_sorted: (N,) non-decreasing cluster id."""
    N, Cin = X.shape
    Cout = W.shape[1]
    # The torch module scatters conv output back into X, so in == out channels.
    assert Cin == Cout, "ClusterGCNLayer scatter-back requires in_channels == out_channels"

    blk = int(np.lcm(tm, tk))
    Np = ((N + blk - 1) // blk) * blk
    Cp = ((Cout + lane - 1) // lane) * lane

    # Weight matmul hoisted out of the kernel via associativity (tiny op).
    XW = jnp.dot(X.astype(jnp.float32), W.astype(jnp.float32))

    # Lane-dense zero padding. A and XW stream as bf16 (f32 MXU accumulation);
    # passthrough X / bias / mask stay f32.
    A_p  = jnp.zeros((Np, Np), jnp.bfloat16).at[:N, :N].set(A_norm.astype(jnp.bfloat16))
    XW_p = jnp.zeros((Np, Cp), jnp.bfloat16).at[:N, :Cout].set(XW.astype(jnp.bfloat16))
    X_p  = jnp.zeros((Np, Cp), jnp.float32).at[:N, :Cin].set(X.astype(jnp.float32))
    b_p  = jnp.zeros((1, Cp), jnp.float32).at[0, :Cout].set(jnp.reshape(b, (-1,)).astype(jnp.float32))
    m_p  = jnp.zeros((Np, 1), jnp.float32).at[:N, 0].set(node_mask.astype(jnp.float32))

    # --- scalar-prefetch table: which column blocks can be non-zero per row block ---
    n_i = Np // tm
    cs = np.asarray(cluster_sorted)
    assert np.all(np.diff(cs) >= 0), "nodes must be sorted by cluster"

    starts = np.zeros(n_i, np.int32)
    counts = np.ones(n_i, np.int32)
    for i in range(n_i):
        r0 = i * tm
        if r0 >= N:            # fully padded row block: one all-zero step
            starts[i], counts[i] = 0, 1
            continue
        r1 = min((i + 1) * tm, N) - 1
        col_lo = int(np.searchsorted(cs, cs[r0], side="left"))
        col_hi = int(np.searchsorted(cs, cs[r1], side="right")) - 1
        kb0, kb1 = col_lo // tk, col_hi // tk
        starts[i], counts[i] = kb0, kb1 - kb0 + 1
    max_k = int(counts.max())
    kmap_np = np.zeros((n_i, max_k), np.int32)
    for i in range(n_i):
        for j in range(max_k):
            kmap_np[i, j] = starts[i] + min(j, int(counts[i]) - 1)
    kmap = jnp.asarray(kmap_np)
    nval = jnp.asarray(counts)

    grid = (n_i, max_k)

    out = pl.pallas_call(
        cluster_gcn_kernel,
        out_shape=jax.ShapeDtypeStruct((Np, Cp), jnp.float32),
        grid_spec=pltpu.PrefetchScalarGridSpec(
            num_scalar_prefetch=2,
            grid=grid,
            in_specs=[
                pl.BlockSpec((tm, tk), lambda i, k, kmap, nval: (i, kmap[i, k])),   # A tile (bf16)
                pl.BlockSpec((tk, Cp), lambda i, k, kmap, nval: (kmap[i, k], 0)),   # XW tile (bf16)
                pl.BlockSpec((tm, Cp), lambda i, k, kmap, nval: (i, 0)),            # passthrough X (f32)
                pl.BlockSpec((1, Cp),  lambda i, k, kmap, nval: (0, 0)),            # bias
                pl.BlockSpec((tm, 1),  lambda i, k, kmap, nval: (i, 0)),            # per-node update mask
            ],
            out_specs=pl.BlockSpec((tm, Cp), lambda i, k, kmap, nval: (i, 0)),
        ),
        compiler_params=pltpu.CompilerParams(
            dimension_semantics=("parallel", "arbitrary"),
            vmem_limit_bytes=48 * 1024 * 1024,
        ),
    )(kmap, nval, A_p, XW_p, X_p, b_p, m_p)

    return out[:N, :Cout]


if __name__ == "__main__":
    key = jax.random.PRNGKey(0)
    N, C, E, n_clusters = 1024, 64, 8192, 8   # in_channels == out_channels (required)
    k1, k2, k3, k4, k5, k6 = jax.random.split(key, 6)

    # deterministic cluster assignment + edge index
    cluster = np.asarray(jax.random.randint(k1, (N,), 0, n_clusters, dtype=jnp.int32))
    src = np.asarray(jax.random.randint(k2, (E,), 0, N, dtype=jnp.int32))
    dst = np.asarray(jax.random.randint(k3, (E,), 0, N, dtype=jnp.int32))
    # force the last cluster to have NO intra-cluster edges -> exercises the "skip cluster" path
    keep = ~((cluster[src] == n_clusters - 1) & (cluster[dst] == n_clusters - 1))
    src, dst = src[keep], dst[keep]

    # node features + deterministic GCNConv parameters (glorot-style uniform)
    X = jax.random.normal(k4, (N, C), dtype=jnp.float32)
    limit = float(np.sqrt(6.0 / (C + C)))
    W = jax.random.uniform(k5, (C, C), jnp.float32, -limit, limit)
    b = jax.random.uniform(k6, (1, C), jnp.float32, -limit, limit)

    # --- glue: sort nodes by cluster so the intra-cluster adjacency is block-diagonal ---
    perm = np.argsort(cluster, kind="stable")            # sorted position -> original node id
    new_of_old = np.empty(N, np.int64)
    new_of_old[perm] = np.arange(N)
    cluster_s = cluster[perm]                            # non-decreasing
    X_s = jnp.asarray(np.asarray(X)[perm])
    src_s, dst_s = new_of_old[src], new_of_old[dst]

    # per-node "cluster has >=1 intra-cluster edge" mask
    intra = cluster_s[src_s] == cluster_s[dst_s]
    has_edge = np.zeros(n_clusters, bool)
    has_edge[cluster_s[src_s[intra]]] = True
    node_mask_s = jnp.asarray(has_edge[cluster_s].astype(np.float32))   # (N,)

    # dense normalized intra-cluster adjacency (A[target, source]), GCNConv style
    A = np.zeros((N, N), np.float32)
    np.add.at(A, (dst_s[intra], src_s[intra]), 1.0)      # intra-cluster edges only
    A = A + np.eye(N, dtype=np.float32)                  # GCNConv add_self_loops
    deg = A.sum(axis=1)                                  # in-degree incl. self loop
    dinv = 1.0 / np.sqrt(deg)
    A_norm_s = jnp.asarray(A * dinv[:, None] * dinv[None, :])

    # TODO(synk): the per-cluster python-dict node-index remapping of the torch loop has no
    # direct Pallas equivalent; it is absorbed into the block-diagonal dense adjacency above.

    out_s = jax.block_until_ready(
        cluster_gcn_forward(A_norm_s, X_s, W, b, node_mask_s, cluster_s))

    # Reference consistent with the kernel's bf16 streaming of A_norm / XW.
    XW_ref = jnp.dot(X_s.astype(jnp.float32), W.astype(jnp.float32))
    A_bf = A_norm_s.astype(jnp.bfloat16).astype(jnp.float32)
    XW_bf = XW_ref.astype(jnp.bfloat16).astype(jnp.float32)
    ref_bf = jnp.where(node_mask_s[:, None] > 0.5, A_bf @ XW_bf + b, X_s)
    assert jnp.allclose(out_s, ref_bf, atol=5e-2, rtol=5e-2), "mismatch vs bf16-consistent reference"

    # Sanity check against full-f32 semantics (looser: bf16 streaming error).
    ref_f32 = jnp.where(node_mask_s[:, None] > 0.5, A_norm_s @ X_s @ W + b, X_s)
    assert jnp.allclose(out_s, ref_f32, atol=1e-1, rtol=1e-1), "mismatch vs f32 reference"

    # module output in the original node order (X_updated)
    X_updated = out_s[jnp.asarray(new_of_old)]
    jax.block_until_ready(X_updated)

    print("KERNEL_OK")
</pallas_src>

<mosaic_0001>
module attributes {stable_mosaic.version = 11 : i64} {
  func.func @cluster_gcn_kernel(%arg0: i32, %arg1: i32, %arg2: memref<4x3xi32, #tpu.memory_space<smem>>, %arg3: memref<4xi32, #tpu.memory_space<smem>>, %arg4: memref<256x256xbf16, #tpu.memory_space<vmem>>, %arg5: memref<256x128xbf16, #tpu.memory_space<vmem>>, %arg6: memref<256x128xf32, #tpu.memory_space<vmem>>, %arg7: memref<1x128xf32, #tpu.memory_space<vmem>>, %arg8: memref<256x1xf32, #tpu.memory_space<vmem>>, %arg9: memref<256x128xf32, #tpu.memory_space<vmem>>) attributes {dimension_semantics = [#tpu.dimension_semantics<parallel>, #tpu.dimension_semantics<arbitrary>], iteration_bounds = array<i64: 4, 3>, scalar_prefetch = 2 : i64, scratch_operands = 0 : i64, tpu.core_type = #tpu.core_type<tc>, window_params = [{transform_indices = @transform_0, window_bounds = array<i64: 256, 256>}, {transform_indices = @transform_1, window_bounds = array<i64: 256, 128>}, {transform_indices = @transform_2, window_bounds = array<i64: 256, 128>}, {pipeline_mode = #tpu.pipeline_mode<synchronous>, transform_indices = @transform_3, window_bounds = array<i64: 1, 128>}, {transform_indices = @transform_4, window_bounds = array<i64: 256, 1>}, {transform_indices = @transform_5, window_bounds = array<i64: 256, 128>}]} {
    %c0_i32 = arith.constant 0 : i32
    %0 = arith.cmpi eq, %arg1, %c0_i32 : i32
    %1 = arith.extui %0 : i1 to i32
    %c0_i32_0 = arith.constant 0 : i32
    %2 = arith.cmpi ne, %1, %c0_i32_0 : i32
    scf.if %2 {
      %cst = arith.constant 0.000000e+00 : f32
      %11 = vector.broadcast %cst : f32 to vector<256x128xf32>
      %c0 = arith.constant 0 : index
      %c0_3 = arith.constant 0 : index
      %12 = vector.load %arg9[%c0, %c0_3] : memref<256x128xf32, #tpu.memory_space<vmem>>, vector<256x128xf32>
      tpu.vector_store %arg9[%c0, %c0_3], %11 {strides = array<i32>} : memref<256x128xf32, #tpu.memory_space<vmem>>, vector<256x128xf32>,
    } else {
    }
    %3 = arith.index_cast %arg0 : i32 to index
    %4 = memref.load %arg3[%3] : memref<4xi32, #tpu.memory_space<smem>>
    %5 = arith.cmpi slt, %arg1, %4 : i32
    %6 = arith.extui %5 : i1 to i32
    %c0_i32_1 = arith.constant 0 : i32
    %7 = arith.cmpi ne, %6, %c0_i32_1 : i32
    scf.if %7 {
      %c0 = arith.constant 0 : index
      %c0_3 = arith.constant 0 : index
      %11 = vector.load %arg9[%c0, %c0_3] : memref<256x128xf32, #tpu.memory_space<vmem>>, vector<256x128xf32>
      %c0_4 = arith.constant 0 : index
      %c0_5 = arith.constant 0 : index
      %12 = vector.load %arg4[%c0_4, %c0_5] : memref<256x256xbf16, #tpu.memory_space<vmem>>, vector<256x256xbf16>
      %c0_6 = arith.constant 0 : index
      %c0_7 = arith.constant 0 : index
      %13 = vector.load %arg5[%c0_6, %c0_7] : memref<256x128xbf16, #tpu.memory_space<vmem>>, vector<256x128xbf16>
      %cst = arith.constant dense<0.000000e+00> : vector<256x128xf32>
      %14 = tpu.matmul %12, %13, %cst {dimension_numbers = #tpu.dot_dimension_numbers<[1], [0], [0], [1], [0, 0, 1, 1], [], []>} : vector<256x256xbf16>, vector<256x128xbf16>, vector<256x128xf32> -> vector<256x128xf32>
      %15 = arith.addf %11, %14 : vector<256x128xf32>
      %c0_8 = arith.constant 0 : index
      %c0_9 = arith.constant 0 : index
      %16 = vector.load %arg9[%c0_8, %c0_9] : memref<256x128xf32, #tpu.memory_space<vmem>>, vector<256x128xf32>
      tpu.vector_store %arg9[%c0_8, %c0_9], %15 {strides = array<i32>} : memref<256x128xf32, #tpu.memory_space<vmem>>, vector<256x128xf32>,
    } else {
    }
    %c2_i32 = arith.constant 2 : i32
    %8 = arith.cmpi eq, %arg1, %c2_i32 : i32
    %9 = arith.extui %8 : i1 to i32
    %c0_i32_2 = arith.constant 0 : i32
    %10 = arith.cmpi ne, %9, %c0_i32_2 : i32
    scf.if %10 {
      %c0 = arith.constant 0 : index
      %c0_3 = arith.constant 0 : index
      %11 = vector.load %arg9[%c0, %c0_3] : memref<256x128xf32, #tpu.memory_space<vmem>>, vector<256x128xf32>
      %c0_4 = arith.constant 0 : index
      %c0_5 = arith.constant 0 : index
      %12 = vector.load %arg7[%c0_4, %c0_5] : memref<1x128xf32, #tpu.memory_space<vmem>>, vector<1x128xf32>
      %13 = vector.broadcast %12 : vector<1x128xf32> to vector<256x128xf32>
      %14 = arith.addf %11, %13 : vector<256x128xf32>
      %c0_6 = arith.constant 0 : index
      %c0_7 = arith.constant 0 : index
      %15 = vector.load %arg8[%c0_6, %c0_7] : memref<256x1xf32, #tpu.memory_space<vmem>>, vector<256x1xf32>
      %cst = arith.constant 5.000000e-01 : f32
      %16 = vector.broadcast %cst : f32 to vector<256x1xf32>
      %17 = arith.cmpf ogt, %15, %16 : vector<256x1xf32>
      %c0_8 = arith.constant 0 : index
      %c0_9 = arith.constant 0 : index
      %18 = vector.load %arg6[%c0_8, %c0_9] : memref<256x128xf32, #tpu.memory_space<vmem>>, vector<256x128xf32>
      %19 = vector.shape_cast %17 : vector<256x1xi1> to vector<256x1xi1>
      %20 = vector.broadcast %19 : vector<256x1xi1> to vector<256x128xi1>
      %21 = arith.select %20, %14, %18 : vector<256x128xi1>, vector<256x128xf32>
      %c0_10 = arith.constant 0 : index
      %c0_11 = arith.constant 0 : index
      %22 = vector.load %arg9[%c0_10, %c0_11] : memref<256x128xf32, #tpu.memory_space<vmem>>, vector<256x128xf32>
      tpu.vector_store %arg9[%c0_10, %c0_11], %21 {strides = array<i32>} : memref<256x128xf32, #tpu.memory_space<vmem>>, vector<256x128xf32>,
    } else {
    }
    return
  }
  func.func @transform_0(%arg0: i32, %arg1: i32, %arg2: memref<4x3xi32, #tpu.memory_space<smem>>, %arg3: memref<4xi32, #tpu.memory_space<smem>>) -> (i32, i32) {
    %0 = arith.index_cast %arg0 : i32 to index
    %1 = arith.index_cast %arg1 : i32 to index
    %2 = memref.load %arg2[%0, %1] : memref<4x3xi32, #tpu.memory_space<smem>>
    %c0_i32 = arith.constant 0 : i32
    return %arg0, %2 : i32, i32
  }
  func.func @transform_1(%arg0: i32, %arg1: i32, %arg2: memref<4x3xi32, #tpu.memory_space<smem>>, %arg3: memref<4xi32, #tpu.memory_space<smem>>) -> (i32, i32) {
    %0 = arith.index_cast %arg0 : i32 to index
    %1 = arith.index_cast %arg1 : i32 to index
    %2 = memref.load %arg2[%0, %1] : memref<4x3xi32, #tpu.memory_space<smem>>
    %c0_i32 = arith.constant 0 : i32
    %c0_i32_0 = arith.constant 0 : i32
    return %2, %c0_i32 : i32, i32
  }
  func.func @transform_2(%arg0: i32, %arg1: i32, %arg2: memref<4x3xi32, #tpu.memory_space<smem>>, %arg3: memref<4xi32, #tpu.memory_space<smem>>) -> (i32, i32) {
    %c0_i32 = arith.constant 0 : i32
    %c0_i32_0 = arith.constant 0 : i32
    return %arg0, %c0_i32 : i32, i32
  }
  func.func @transform_3(%arg0: i32, %arg1: i32, %arg2: memref<4x3xi32, #tpu.memory_space<smem>>, %arg3: memref<4xi32, #tpu.memory_space<smem>>) -> (i32, i32) {
    %c0_i32 = arith.constant 0 : i32
    %c0_i32_0 = arith.constant 0 : i32
    %c0_i32_1 = arith.constant 0 : i32
    return %c0_i32, %c0_i32_0 : i32, i32
  }
  func.func @transform_4(%arg0: i32, %arg1: i32, %arg2: memref<4x3xi32, #tpu.memory_space<smem>>, %arg3: memref<4xi32, #tpu.memory_space<smem>>) -> (i32, i32) {
    %c0_i32 = arith.constant 0 : i32
    %c0_i32_0 = arith.constant 0 : i32
    return %arg0, %c0_i32 : i32, i32
  }
  func.func @transform_5(%arg0: i32, %arg1: i32, %arg2: memref<4x3xi32, #tpu.memory_space<smem>>, %arg3: memref<4xi32, #tpu.memory_space<smem>>) -> (i32, i32) {
    %c0_i32 = arith.constant 0 : i32
    %c0_i32_0 = arith.constant 0 : i32
    return %arg0, %c0_i32 : i32, i32
  }
}

</mosaic_0001>

<bundles_post_ra>
// kernel: tpu_custom_call.1
= control target key start
LH: loop header
LB: loop body
LE: loop exit
PB: predicated region body
PF: predicated region fallthrough
CT: control target
= control target key end

     0   :  { %s3271_s0 = inlined_call_operand.hbm [shape: s32[4,3], index: 0, kind: input, shape index: {}]   ;;  %s3272_s2 = inlined_call_operand.hbm [shape: bf16[1024,1024], index: 2, kind: input, shape index: {}]   ;;  %s3273_s3 = inlined_call_operand.hbm [shape: bf16[1024,128], index: 3, kind: input, shape index: {}]   ;;  %s3274_s4 = inlined_call_operand.hbm [shape: f32[1024,128], index: 4, kind: input, shape index: {}]   ;;  %s3275_s5 = inlined_call_operand.hbm [shape: f32[1,128], index: 5, kind: input, shape index: {}]   ;;  %s3276_s6 = inlined_call_operand.vmem [shape: f32[1024,1], index: 6, kind: input, shape index: {}]   ;;  %s3277_s7 = inlined_call_operand.hbm [shape: f32[1024,128], index: 7, kind: output, shape index: {}]   ;;  %s3278_s1 = inlined_call_operand.hbm [shape: s32[4], index: 1, kind: input, shape index: {}]  }
   0x1   :  { %3308 = sst [smem:[#allocation40_spill]] %s3272_s2  ;;  %s2080_s26 = scalar_lea.hbm %s3271_s0, 64 }
   0x2   :  { %3309 = sst [smem:[#allocation41_spill]] %s3273_s3  ;;  %p2081_p0 = scmp.ne.s32.totalorder %s3271_s0, %s2080_s26 }
   0x3   :  { %3310 = sst [smem:[#allocation42_spill]] %s3274_s4  ;;  %p2084_p1 = scmp.lt.u32.totalorder %s2080_s26, %s3271_s0 }
   0x4   :  { %3311 = sst [smem:[#allocation43_spill]] %s3275_s5 }
   0x5   :  { %3312 = sst [smem:[#allocation44_spill]] %s3276_s6  ;;  %p2086_p2 = pnand %p2084_p1, %p2081_p0 }
   0x6   :  { %3313 = sst [smem:[#allocation45_spill]] %s3277_s7 }
   0x7   :  { %2089 = shalt.err (!%p2086_p2)  }
   0x8   :  { %s2380_s8 = smov [#allocation3]   ;;  %s2090_s13 = scalar_lea.hbm %s3278_s1, 16 }
   0x9   :  { %13 = dma.hbm_to_smem %s3271_s0, 64, %s2380_s8, [#allocation2] }
   0xa   :  { %p2091_p3 = scmp.ne.s32.totalorder %s3278_s1, %s2090_s13  ;;  %p2094_p4 = scmp.lt.u32.totalorder %s2090_s13, %s3278_s1 }
   0xc   :  { %p2096_p5 = pnand %p2094_p4, %p2091_p3 }
   0xe   :  { %2099 = shalt.err (!%p2096_p5)  }
   0xf   :  { %s2381_s18 = smov [#allocation4]  }
  0x10   :  { %15 = dma.hbm_to_smem %s3278_s1, 16, %s2381_s18, [#allocation2] }
  0x11   :  { %2302 = dma.done.wait [#allocation2], 80 }
  0x12   :  { %2303 = vsyncadd [#allocation2], 4294967216 }
  0x13   :  { %17 = sfence }
  0x14   :  { %18 = vsyncpa [#allocation6], 0 }
  0x15   :  { %20 = vsyncpa [#allocation6 + $0x1], 0 }
  0x16   :  { %21 = vsyncpa [#allocation9], 0 }
  0x17   :  { %23 = vsyncpa [#allocation9 + $0x1], 0 }
  0x18   :  { %24 = vsyncpa [#allocation12], 0 }
  0x19   :  { %25 = vsyncpa [#allocation7], 0 }
  0x1a   :  { %27 = vsyncpa [#allocation7 + $0x1], 0  ;;  %s2460_s0 = smov 0   ;;  %s2462_s21 = smov 0  }
  0x1b   :  { %s2464_s22 = smov 0   ;;  %s2466_s23 = smov 0  }
  0x1c   :  { %s2468_s24 = smov 0   ;;  %s2470_s1 = smov 0  }
  0x1d   :  { %s2472_s25 = smov 0   ;;  %s2474_s26 = smov 0  }
  0x1e   :  { %s2476_s27 = smov 0   ;;  %s2478_s28 = smov 0  }
  0x1f   :  { %s2480_s29 = smov 0   ;;  %s2482_s30 = smov 0  }
  0x20   :  { %s2484_s8 = smov 0   ;;  %s2486_s9 = smov 0  }
  0x21 LB: > { %3314 = sst [smem:[#allocation24_spill]] %s2326_s0  ;;  %s42_s10 = sadd.s32 1, %s2370_s30  ;;  %s2378_s9 = sphi %s2486_s9, %s33_s9   ;;  %s2374_s8 = sphi %s2484_s8, %s3396_s8   ;;  %s2370_s30 = sphi %s2482_s30, %s3387_s30   ;;  %s2366_s29 = sphi %s2480_s29, %s3395_s29   ;;  %s2362_s28 = sphi %s2478_s28, %s3386_s28   ;;  %s2358_s27 = sphi %s2476_s27, %s3385_s27   ;;  %s2354_s26 = sphi %s2474_s26, %s3394_s26   ;;  %s2350_s25 = sphi %s2472_s25, %s3393_s25   ;;  %s2346_s1 = sphi %s2470_s1, %s3383_s1   ;;  %s2342_s24 = sphi %s2468_s24, %s3392_s24   ;;  %s2338_s23 = sphi %s2466_s23, %s3391_s23   ;;  %s2334_s22 = sphi %s2464_s22, %s3390_s22   ;;  %s2330_s21 = sphi %s2462_s21, %s3389_s21   ;;  %s2326_s0 = sphi %s2460_s0, %s3380_s0  }
  0x22   : > { %3315 = sst [smem:[#allocation25_spill]] %s2330_s21  ;;  %s45_s11 = sadd.s32 1, %s2374_s8 }
  0x23   : > { %3316 = sst [smem:[#allocation26_spill]] %s2346_s1  ;;  %p43_p6 = scmp.ge.s32.totalorder %s42_s10, 3 }
  0x24   : > { %3317 = sst [smem:[#allocation27_spill]] %s2358_s27  ;;  %s49_s12 = sshra.s32 %s2370_s30, 7 }
  0x25   : > { %3318 = sst [smem:[#allocation28_spill]] %s2362_s28  ;;  %s51_s13 = sadd.s32 %s2374_s8, %s49_s12 }
  0x26   : > { %3319 = sst [smem:[#allocation29_spill]] %s2366_s29  ;;  %s54_s14 = sand.u32 127, %s2370_s30 }
  0x27   : > { %3320 = sst [smem:[#allocation30_spill]] %s2370_s30  ;;  %s3398_s10 = smov (%p43_p6, %s42_s10), 0 }
  0x28   : > { %3321 = sst [smem:[#allocation31_spill]] %s2378_s9  ;;  %s3400_s11 = smov (!%p43_p6, %s45_s11), %s2374_s8 }
  0x29   : > { %3322 = sst [smem:[#allocation32_spill]] %s3398_s10  ;;  %s1631_s15 = sshll.u32 %s51_s13, 7 }
  0x2a   : > { %s57_s16 = sshra.s32 %s3398_s10, 7  ;;  %p47_p7 = scmp.ge.s32.totalorder %s3400_s11, 4 }
  0x2b   : > { %s2539_s17 = sadd.s32 %s1631_s15, %s54_s14  ;;  %s62_s19 = sand.u32 127, %s3398_s10 }
  0x2c   : > { %s2542_s18 = sld [smem:[#allocation3 + %s2539_s17]]  ;;  %s3402_s11 = smov (%p47_p7, %s3400_s11), 0 }
  0x2d   : > { %3324 = sst [smem:[#allocation34_spill]] %s3402_s11  ;;  %p3288_p8 = scmp.eq.s32.totalorder %s2378_s9, 0 }
  0x2e   : > { %s100_s20 = sld [smem:[#allocation3 + %s2539_s17]]  ;;  %s59_s12 = sadd.s32 %s57_s16, %s3402_s11 }
  0x2f   : > { %s112_s13 = sadd.s32 1, %s2346_s1  ;;  %s1632_s30 = sshll.u32 %s59_s12, 7 }
  0x30   : > { %p119_p9 = scmp.ne.s32.totalorder %s2346_s1, %s2342_s24  ;;  %s63_s7 = sadd.s32 %s1632_s30, %s62_s19 }
  0x31   : > { %s2553_s14 = sld [smem:[#allocation3 + %s63_s7]]  ;;  %p3286_p11 = scmp.lt.s32.totalorder %s2378_s9, 12 }
  0x32   : > { %3323 = sst [smem:[#allocation33_spill]] %s2542_s18  ;;  %p2557_p10 = por %p119_p9, %p3288_p8 }
  0x33   : > { %s108_s15 = sld [smem:[#allocation3 + %s63_s7]]  ;;  %s291_s16 = sand.u32 1, %s2378_s9  }
  0x34   : > { %s293_s12 = sand.u32 1, %s2346_s1   ;;  %p2568_p12 = pnand %p3286_p11, %p2557_p10 }
  0x35   : > { %s1644_s28 = sshll.u32 %s293_s12, 7  ;;  %s3328_s3 = sld [smem:[#allocation41_spill]] }
  0x36   : > { %s1853_s7 = scalar_select %p2557_p10, [#allocation3], [#allocation15] }
  0x37   : > { %s295_s6 = scalar_lea.vmem [#allocation8], %s1644_s28  ;;  %p2102_p1 = pneg %p2568_p12 }
  0x38   : > { %s310_s29 = sshll.u32 %s295_s6, 4  ;;  %s3404_s7 = smov (!%p3286_p11, %s1853_s7), [#allocation17]  ;;  %s2574_s29 = int_to_ptr.vmem [resolvable:$true] %s310_s29 }
  0x39   : > { %s109_s19 = ssub.s32 %s100_s20, %s108_s15  ;;  %s2591_s6 = scalar_lea.sflag [#allocation9], %s291_s16 }
  0x3a   : > { %p110_p13 = scmp.eq.s32.totalorder %s109_s19, 0 }
  0x3b   : > { %s1854_s2 = scalar_select %p2557_p10, %s2539_s17, 0 }
  0x3c   : > { %s2580_s4 = scalar_select %p110_p13, %s2346_s1, %s112_s13  }
  0x3d   : > { %s3406_s2 = smov (!%p3286_p11, %s1854_s2), 0  ;;  %s2105_s27 = scalar_lea.hbm %s3328_s3, 8192 }
  0x3e   : > { %3327 = sst [smem:[#allocation35_spill]] %s2580_s4 }
  0x3f   : > { %s303_s12 = sld [smem:[%s3404_s7 + %s3406_s2]] }
  0x45   : > { %s1717_s5 = sshll.u32 %s303_s12, 11 }
  0x46   : > { %s2589_s20 = scalar_lea.hbm %s3328_s3, %s1717_s5 }
  0x47   : > { %s2100_s28 = scalar_lea.hbm %s2589_s20, 2048  ;;  %p2106_p4 = scmp.lt.u32.totalorder %s2589_s20, %s3328_s3 }
  0x48   : > { %p2101_p0 = scmp.ne.s32.totalorder %s2589_s20, %s2100_s28  ;;  %p2107_p5 = scmp.lt.u32.totalorder %s2105_s27, %s2100_s28 }
  0x49   : > { %p2109_p7 = scmp.lt.u32.totalorder %s2100_s28, %s2589_s20 }
  0x4a   : > { %p2103_p2 = pnand %p2102_p1, %p2101_p0  ;;  %p2108_p6 = por %p2107_p5, %p2106_p4 }
  0x4c   : > { %p2104_p3 = pneg %p2103_p2  ;;  %p2110_p9 = por %p2109_p7, %p2108_p6 }
  0x4e   : > { %p2111_p10 = pnand %p2110_p9, %p2104_p3 }
  0x50   : > { %2114 = shalt.err (!%p2111_p10)
}
  0x51   : > { %s2115_s13 = scalar_lea.vmem %s2574_s29, 2048  ;;  %s2382_s15 = smov [#allocation8]  }
  0x52   : > { %p2116_p13 = scmp.ne.s32.totalorder %s2574_s29, %s2115_s13  ;;  %s2120_s16 = sshll.u32 %s2382_s15, 4  ;;  %s2121_s16 = int_to_ptr.vmem [resolvable:$false] %s2120_s16 }
  0x53   : > { %s2122_s7 = scalar_lea.vmem %s2121_s16, 4096  ;;  %p2123_p11 = scmp.lt.s32.totalorder %s2574_s29, %s2121_s16 }
  0x54   : > { %p2118_p0 = pnand %p2116_p13, %p2102_p1  ;;  %p2124_p4 = scmp.lt.s32.totalorder %s2122_s7, %s2115_s13 }
  0x56   : > { %p2119_p2 = pneg %p2118_p0  ;;  %p2125_p5 = por %p2124_p4, %p2123_p11 }
  0x58   : > { %p2126_p6 = pnand %p2125_p5, %p2119_p2 }
  0x5a   : > { %2129 = shalt.err (!%p2126_p6)
}
  0x5b   : > { %s2383_s19 = smov 64   ;;  %s2384_s12 = smov 4  }
  0x5c   : > { %1878 = dma.hbm_to_vmem [thread:$0]  (!%p2568_p12), %s2589_s20, 2048, %s2574_s29, %s2591_s6, %s2383_s19, %s2383_s19, %s2384_s12  }
  0x5d   : > { %s2620_s28 = sadd.s32 4294967295, %s2378_s9   ;;  %s1630_s2 = sadd.s32 4294967294, %s2378_s9  }
  0x5e   : > { %s65_s10 = ssub.s32 %s2374_s8, %s3402_s11  ;;  %p83_p11 = scmp.ne.s32.totalorder %s2354_s26, %s2350_s25 }
  0x5f   : > { %p3289_p1 = scmp.eq.s32.totalorder %s2620_s28, 0  ;;  %p125_p3 = scmp.ne.s32.totalorder %s2342_s24, %s2338_s23 }
  0x60   : > { %p136_p7 = scmp.eq.s32.totalorder %s65_s10, 0  ;;  %s138_s27 = sadd.s32 1, %s2334_s22 }
  0x61   : > { %p2633_p9 = por %p3289_p1, %p83_p11  ;;  %p2639_p12 = por %p125_p3, %p3289_p1 }
  0x62   : > { %s2644_s20 = scalar_select %p136_p7, %s2334_s22, %s138_s27  }
  0x63   : > { %s3329_s29 = scalar_select %p2633_p9, 1, 0 }
  0x64   : > { %s3330_s30 = scalar_select %p2639_p12, 1, 0 }
  0x65   : > { %3331 = sst [smem:[#allocation36_spill]] %s2644_s20  ;;  %p145_p10 = scmp.ne.s32.totalorder %s2334_s22, %s2330_s21 }
  0x66   : > { %p151_p13 = scmp.ne.s32.totalorder %s2330_s21, %s2326_s0  ;;  %s3332_s23 = sld [smem:[#allocation33_spill]] }
  0x67   : > { %p222_p0 = scmp.eq.s32.totalorder %s2620_s28, 11  ;;  %p228_p2 = scmp.eq.s32.totalorder %s1630_s2, 11 }
  0x68   : > { %s3333_s25 = sld [smem:[#allocation27_spill]]  ;;  %p147_p4 = por %p145_p10, %p3288_p8 }
  0x69   : > { %p2655_p5 = por %p151_p13, %p3289_p1  ;;  %p2659_p6 = por %p222_p0, %p145_p10 }
  0x6a   : > { %p2663_p11 = por %p228_p2, %p151_p13  ;;  %p1635_p3 = scmp.ge.s32.totalorder %s2378_s9, 1 }
  0x6b   : > { %s3334_s5 = scalar_select %p2655_p5, 1, 0 }
  0x6c   : > { %s3336_s18 = scalar_select %p2659_p6, 1, 0 }
  0x6d   : > { %3335 = sst [smem:[#allocation33_spill]] %s3334_s5  ;;  %p235_p7 = scmp.lt.s32.totalorder %s2378_s9, 13 }
  0x6e   : > { %3337 = sst [smem:[#allocation37_spill]] %s3336_s18  ;;  %s2385_s16 = smov [#allocation11]  }
  0x6f   : > { %s3338_s13 = scalar_select %p2663_p11, 1, 0 }
  0x70   : > { %p2669_p12 = pnand %p1635_p3, %p235_p7  ;;  %s248_s7 = sshll.u32 %s2385_s16, 4  ;;  %s249_s7 = int_to_ptr.vmem [resolvable:$true] %s248_s7 }
  0x71   : > { %3339 = sst [smem:[#allocation38_spill]] %s3338_s13  ;;  %p3341_p8 = scmp.lt.s32.totalorder %s2378_s9, 12 }
  0x72   : > { %s3340_s15 = scalar_select %p2669_p12, 1, 0 }
  0x73   : > { %p2675_p1 = pnand %p3341_p8, %p147_p4  ;;  %p1864_p10 = pneg %p2669_p12 }
  0x74   : > { %p3343_p13 = scmp.eq.s32.totalorder %s2620_s28, 0  ;;  %s66_s2 = ssub.s32 %s3332_s23, %s2553_s14 }
  0x75   : > { %s3342_s19 = scalar_select %p2675_p1, 1, 0 }
  0x76   : > { %p2683_p0 = pnand %p1864_p10, %p3343_p13  ;;  %s67_s27 = sor.u32 %s66_s2, %s65_s10 }
  0x77   : > { %s70_s3 = sadd.s32 1, %s3333_s25  ;;  %s3345_s4 = sld [smem:[#allocation43_spill]] }
  0x78   : > { %p2132_p4 = pneg %p2683_p0 }
  0x7d   : > { %s2130_s1 = scalar_lea.hbm %s3345_s4, 16 }
  0x7e   : > { %p2131_p8 = scmp.ne.s32.totalorder %s3345_s4, %s2130_s1  ;;  %p2137_p10 = scmp.lt.u32.totalorder %s2130_s1, %s3345_s4 }
  0x80   : > { %p2133_p3 = pnand %p2132_p4, %p2131_p8 }
  0x82   : > { %p2134_p7 = pneg %p2133_p3 }
  0x84   : > { %p2139_p13 = pnand %p2137_p10, %p2134_p7 }
  0x86   : > { %2142 = shalt.err (!%p2139_p13)
}
  0x87   : > { %s2143_s14 = scalar_lea.vmem %s249_s7, 16  ;;  %s2150_s11 = scalar_lea.vmem %s249_s7, 32 }
  0x88   : > { %p2144_p2 = scmp.ne.s32.totalorder %s249_s7, %s2143_s14  ;;  %p2151_p5 = scmp.lt.s32.totalorder %s249_s7, %s249_s7 }
  0x89   : > { %p2152_p9 = scmp.lt.s32.totalorder %s2150_s11, %s2143_s14 }
  0x8a   : > { %p2146_p11 = pnand %p2144_p2, %p2132_p4 }
  0x8b   : > { %p2153_p12 = por %p2152_p9, %p2151_p5 }
  0x8c   : > { %p2147_p6 = pneg %p2146_p11 }
  0x8e   : > { %p2154_p1 = pnand %p2153_p12, %p2147_p6 }
  0x90   : > { %2157 = shalt.err (!%p2154_p1)
}
  0x91   : > { %1867 = dma.hbm_to_vmem [thread:$0]  (!%p2683_p0), %s3345_s4, 16, %s249_s7, [#allocation12]  }
  0x92   : > { %p3346_p11 = scmp.eq.s32.totalorder %s67_s27, 0  ;;  %p77_p1 = scmp.ne.s32.totalorder %s3333_s25, %s2354_s26 }
  0x93   : > { %s259_s1 = sand.u32 1, %s3333_s25   ;;  %p3348_p9 = scmp.eq.s32.totalorder %s2378_s9, 0 }
  0x94   : > { %s2708_s0 = scalar_select %p3346_p11, %s3333_s25, %s70_s3  }
  0x95   : > { %s1638_s23 = sshll.u32 %s259_s1, 8  ;;  %p79_p12 = por %p3348_p9, %p77_p1 }
  0x96   : > { %3347 = sst [smem:[#allocation39_spill]] %s2708_s0  ;;  %p3349_p5 = scmp.lt.s32.totalorder %s2378_s9, 12 }
  0x97   : > { %s1850_s18 = scalar_select %p79_p12, [#allocation3], [#allocation14] }
  0x98   : > { %s3408_s17 = smov (!%p79_p12, %s2539_s17), 0  ;;  %p3350_p6 = pmov %p3349_p5 }
  0x99   : > { %s3410_s18 = smov (!%p3349_p5, %s1850_s18), [#allocation16]  ;;  %s263_s13 = scalar_lea.vmem [#allocation5], %s1638_s23 }
  0x9a   : > { %s3412_s17 = smov (!%p3350_p6, %s3408_s17), 0  ;;  %s281_s12 = sshll.u32 %s263_s13, 4  ;;  %s2727_s12 = int_to_ptr.vmem [resolvable:$true] %s281_s12 }
  0x9b   : > { %p3351_p2 = pmov %p3349_p5  ;;  %s271_s3 = sld [smem:[%s3410_s18 + %s3412_s17]] }
  0x9c   : > { %s1716_s2 = sshll.u32 %s2374_s8, 8  ;;  %s322_s25 = sand.u32 1, %s2334_s22  }
  0x9d   : > { %p2722_p0 = pnand %p3351_p2, %p79_p12  ;;  %s1648_s27 = sshll.u32 %s322_s25, 8 }
  0x9e   : > { %s1718_s16 = sshll.u32 %s2374_s8, 12  ;;  %s324_s14 = scalar_lea.vmem [#allocation10], %s1648_s27 }
  0x9f   : > { %s331_s11 = sshll.u32 %s324_s14, 4  ;;  %s3353_s4 = sld [smem:[#allocation42_spill]]  ;;  %s2736_s11 = int_to_ptr.vmem [resolvable:$true] %s331_s11 }
  0xa0   : > { %s3354_s5 = sld [smem:[#allocation40_spill]]  ;;  %s2743_s25 = scalar_lea.sflag [#allocation6], %s259_s1 }
  0xa1   : > { %s1641_s10 = sshll.u32 %s271_s3, 1  ;;  %p2160_p4 = pneg %p2722_p0 }
  0xa2   : > { %s278_s20 = sadd.s32 %s1716_s2, %s1641_s10 }
  0xa3   : > { %s1643_s9 = sshll.u32 %s278_s20, 6 }
  0xa5   : > { %s2734_s0 = scalar_lea.hbm %s3353_s4, %s1718_s16 }
  0xa6   : > { %s2741_s21 = scalar_lea.hbm %s3354_s5, %s1643_s9  ;;  %s2163_s16 = scalar_lea.hbm %s3354_s5, 65536 }
  0xa7   : > { %s2158_s3 = scalar_lea.hbm %s2741_s21, 4096  ;;  %p2164_p10 = scmp.lt.u32.totalorder %s2741_s21, %s3354_s5 }
  0xa8   : > { %p2159_p8 = scmp.ne.s32.totalorder %s2741_s21, %s2158_s3  ;;  %p2165_p13 = scmp.lt.u32.totalorder %s2163_s16, %s2158_s3 }
  0xa9   : > { %p2167_p1 = scmp.lt.u32.totalorder %s2158_s3, %s2741_s21 }
  0xaa   : > { %p2161_p3 = pnand %p2160_p4, %p2159_p8  ;;  %p2166_p11 = por %p2165_p13, %p2164_p10 }
  0xac   : > { %p2162_p7 = pneg %p2161_p3  ;;  %p2168_p9 = por %p2167_p1, %p2166_p11 }
  0xae   : > { %p2169_p12 = pnand %p2168_p9, %p2162_p7 }
  0xb0   : > { %2172 = shalt.err (!%p2169_p12)
}
  0xb1   : > { %s2173_s1 = scalar_lea.vmem %s2727_s12, 4096  ;;  %s2386_s10 = smov [#allocation5]  }
  0xb2   : > { %p2174_p5 = scmp.ne.s32.totalorder %s2727_s12, %s2173_s1  ;;  %s2178_s20 = sshll.u32 %s2386_s10, 4  ;;  %s2179_s20 = int_to_ptr.vmem [resolvable:$false] %s2178_s20 }
  0xb3   : > { %s2180_s23 = scalar_lea.vmem %s2179_s20, 8192  ;;  %p2181_p8 = scmp.lt.s32.totalorder %s2727_s12, %s2179_s20 }
  0xb4   : > { %p2176_p6 = pnand %p2174_p5, %p2160_p4  ;;  %p2182_p3 = scmp.lt.s32.totalorder %s2180_s23, %s2173_s1 }
  0xb6   : > { %p2177_p2 = pneg %p2176_p6  ;;  %p2183_p10 = por %p2182_p3, %p2181_p8 }
  0xb8   : > { %p2184_p13 = pnand %p2183_p10, %p2177_p2 }
  0xba   : > { %2187 = shalt.err (!%p2184_p13)
}
  0xbb   : > { %s2387_s13 = smov 512   ;;  %s2388_s17 = smov 128  }
  0xbc   : > { %s2389_s18 = smov 8   ;;  %s2188_s3 = scalar_lea.hbm %s2734_s0, 4096 }
  0xbd   : > { %1873 = dma.hbm_to_vmem [thread:$0]  (!%p2722_p0), %s2741_s21, 4096, %s2727_s12, %s2743_s25, %s2387_s13, %s2388_s17, %s2389_s18  }
  0xbe   : > { %p2189_p4 = scmp.ne.s32.totalorder %s2734_s0, %s2188_s3  ;;  %p3355_p7 = scmp.ne.s32.totalorder %s3342_s19, 0 }
  0xbf   : > { %s2193_s16 = scalar_lea.hbm %s3353_s4, 16384  ;;  %p2194_p12 = scmp.lt.u32.totalorder %s2734_s0, %s3353_s4 }
  0xc0   : > { %p2190_p11 = pneg %p3355_p7  ;;  %p2195_p5 = scmp.lt.u32.totalorder %s2193_s16, %s2188_s3 }
  0xc1   : > { %p2197_p2 = scmp.lt.u32.totalorder %s2188_s3, %s2734_s0 }
  0xc2   : > { %p2191_p1 = pnand %p2190_p11, %p2189_p4  ;;  %p2196_p6 = por %p2195_p5, %p2194_p12 }
  0xc4   : > { %p2192_p9 = pneg %p2191_p1  ;;  %p2198_p0 = por %p2197_p2, %p2196_p6 }
  0xc6   : > { %p2199_p8 = pnand %p2198_p0, %p2192_p9 }
  0xc8   : > { %2202 = shalt.err (!%p2199_p8)
}
  0xc9   : > { %s2203_s21 = scalar_lea.vmem %s2736_s11, 4096  ;;  %s2390_s12 = smov [#allocation10]  }
  0xca   : > { %p2204_p3 = scmp.ne.s32.totalorder %s2736_s11, %s2203_s21  ;;  %s2208_s7 = sshll.u32 %s2390_s12, 4  ;;  %s2209_s7 = int_to_ptr.vmem [resolvable:$false] %s2208_s7 }
  0xcb   : > { %s2210_s25 = scalar_lea.vmem %s2209_s7, 8192  ;;  %p2211_p4 = scmp.lt.s32.totalorder %s2736_s11, %s2209_s7 }
  0xcc   : > { %p2206_p10 = pnand %p2204_p3, %p2190_p11  ;;  %p2212_p1 = scmp.lt.s32.totalorder %s2210_s25, %s2203_s21 }
  0xce   : > { %p2207_p13 = pneg %p2206_p10  ;;  %p2213_p12 = por %p2212_p1, %p2211_p4 }
  0xd0   : > { %p2214_p5 = pnand %p2213_p12, %p2207_p13 }
  0xd2   : > { %2217 = shalt.err (!%p2214_p5)
}
  0xd3   : > { %1881 = dma.hbm_to_vmem [thread:$0]  (!%p3355_p7), %s2734_s0, 4096, %s2736_s11, %s2591_s6, %s2388_s17, %s2388_s17, %s2389_s18  }
  0xd4   : > { %p3356_p11 = scmp.ne.s32.totalorder %s3340_s15, 0 }
  0xd5   : > { %s354_s1 = sand.u32 (!%p3356_p11), 1, %s2354_s26   ;;  %p3357_p9 = scmp.ne.s32.totalorder (!%p3356_p11), %s3329_s29, 0 }
  0xd6   : > { %352 = sbr.rel (%p3356_p11) target bundleno = 817 (0x331), region = 40  ;;  %s1652_s10 = sshll.u32 (!%p3356_p11), %s354_s1, 8 }
  0xd7   : > { %s355_s20 = scalar_lea.sflag (!%p3356_p11), [#allocation6], %s354_s1  ;;  %s2805_s23 = scalar_lea.vmem (!%p3356_p11), [#allocation5], %s1652_s10 }
  0xdd   : > { %2305 = dma.done.wait (%p3357_p9), %s355_s20, 4096  }
  0xde   : > { %2307 = vsyncadd (%p3357_p9), %s355_s20, 4294963200  ;;  %s363_s19 = sand.u32 1, %s2620_s28   ;;  %s365_s6 = sand.u32 1, %s2342_s24  }
  0xdf   : > { %s1653_s0 = sshll.u32 %s365_s6, 7  ;;  %s364_s15 = scalar_lea.sflag [#allocation9], %s363_s19 }
  0xe0   : > { %s2813_s11 = scalar_lea.vmem [#allocation8], %s1653_s0  ;;  %p3358_p7 = scmp.ne.s32.totalorder %s3330_s30, 0 }
  0xe2   : > { %2309 = dma.done.wait (%p3358_p7), %s364_s15, 2048  }
  0xe3   : > { %2311 = vsyncadd (%p3358_p7), %s364_s15, 4294965248  ;;  %s3359_s13 = sld [smem:[#allocation25_spill]]  ;;  %s3360_s17 = sld [smem:[#allocation33_spill]] }
  0xe9   : > { %s374_s18 = sand.u32 1, %s3359_s13   ;;  %p3361_p6 = scmp.ne.s32.totalorder %s3360_s17, 0 }
  0xea   : > { %s1654_s29 = sshll.u32 %s374_s18, 8 }
  0xeb   : > { %s2822_s3 = scalar_lea.vmem [#allocation10], %s1654_s29 }
  0xec   : > { %2313 = dma.done.wait (%p3361_p6), %s364_s15, 4096  }
  0xed   : > { %2315 = vsyncadd (%p3361_p6), %s364_s15, 4294963200  ;;  %p3362_p2 = scmp.eq.s32.totalorder %s2620_s28, 0 }
  0xef   : > { %2317 = dma.done.wait (%p3362_p2), [#allocation12], 16   ;;  %p3363_p0 = pmov %p3362_p2 }
  0xf0   : > { %s3364_s30 = sld [smem:[#allocation29_spill]]  ;;  %s3365_s14 = sld [smem:[#allocation44_spill]] }
  0xf1   : > { %2319 = vsyncadd (%p3363_p0), [#allocation12], 4294967280  ;;  %s2838_s12 = scalar_lea.vmem [#allocation13], %s1654_s29  ;;  %s3366_s7 = sld [smem:[#allocation28_spill]] }
  0xf6   : > { %s1657_s2 = sshll.u32 %s3364_s30, 5 }
  0xf7   : > { %p443_p8 = scmp.lt.s32.totalorder %s1657_s2, 127  ;;  %p1659_p3 = scmp.ne.s32.totalorder %s3366_s7, 0 }
  0xf8   : > { %v2391_v0 = vmov (!%p1659_p3), 0.0  }
  0xf9   : > { %s3414_s2 = smov (!%p443_p8, %s1657_s2), 127  ;;  %453 = sbr.rel (%p1659_p3) target bundleno = 266 (0x10a), region = 60 }
  0xfa   : > { %s1658_s27 = sshll.u32 %s3414_s2, 3  ;;  %454 = vst [vmem:[%s2838_s12] sm:$0xff] (!%p1659_p3), %v2391_v0  ;;  %455 = vst [vmem:[%s2838_s12 + $0x8] sm:$0xff] (!%p1659_p3), %v2391_v0 }
  0xfb   : > { %s2836_s21 = scalar_lea.vmem %s3365_s14, %s1658_s27  ;;  %456 = vst [vmem:[%s2838_s12 + $0x10] sm:$0xff] (!%p1659_p3), %v2391_v0  ;;  %457 = vst [vmem:[%s2838_s12 + $0x18] sm:$0xff] (!%p1659_p3), %v2391_v0 }
  0xfc   : > { %458 = vst [vmem:[%s2838_s12 + $0x20] sm:$0xff] (!%p1659_p3), %v2391_v0  ;;  %459 = vst [vmem:[%s2838_s12 + $0x28] sm:$0xff] (!%p1659_p3), %v2391_v0 }
  0xfd   : > { %460 = vst [vmem:[%s2838_s12 + $0x30] sm:$0xff] (!%p1659_p3), %v2391_v0  ;;  %461 = vst [vmem:[%s2838_s12 + $0x38] sm:$0xff] (!%p1659_p3), %v2391_v0 }
  0xfe   : > { %462 = vst [vmem:[%s2838_s12 + $0x40] sm:$0xff] (!%p1659_p3), %v2391_v0  ;;  %463 = vst [vmem:[%s2838_s12 + $0x48] sm:$0xff] (!%p1659_p3), %v2391_v0 }
  0xff   : > { %464 = vst [vmem:[%s2838_s12 + $0x50] sm:$0xff] (!%p1659_p3), %v2391_v0  ;;  %465 = vst [vmem:[%s2838_s12 + $0x58] sm:$0xff] (!%p1659_p3), %v2391_v0 }
 0x100   : > { %466 = vst [vmem:[%s2838_s12 + $0x60] sm:$0xff] %v2391_v0  ;;  %467 = vst [vmem:[%s2838_s12 + $0x68] sm:$0xff] %v2391_v0 }
 0x101   : > { %468 = vst [vmem:[%s2838_s12 + $0x70] sm:$0xff] %v2391_v0  ;;  %469 = vst [vmem:[%s2838_s12 + $0x78] sm:$0xff] %v2391_v0 }
 0x102   : > { %470 = vst [vmem:[%s2838_s12 + $0x80] sm:$0xff] %v2391_v0  ;;  %471 = vst [vmem:[%s2838_s12 + $0x88] sm:$0xff] %v2391_v0 }
 0x103   : > { %472 = vst [vmem:[%s2838_s12 + $0x90] sm:$0xff] %v2391_v0  ;;  %473 = vst [vmem:[%s2838_s12 + $0x98] sm:$0xff] %v2391_v0 }
 0x104   : > { %474 = vst [vmem:[%s2838_s12 + $0xa0] sm:$0xff] %v2391_v0  ;;  %475 = vst [vmem:[%s2838_s12 + $0xa8] sm:$0xff] %v2391_v0 }
 0x105   : > { %476 = vst [vmem:[%s2838_s12 + $0xb0] sm:$0xff] %v2391_v0  ;;  %477 = vst [vmem:[%s2838_s12 + $0xb8] sm:$0xff] %v2391_v0 }
 0x106   : > { %478 = vst [vmem:[%s2838_s12 + $0xc0] sm:$0xff] %v2391_v0  ;;  %479 = vst [vmem:[%s2838_s12 + $0xc8] sm:$0xff] %v2391_v0 }
 0x107   : > { %480 = vst [vmem:[%s2838_s12 + $0xd0] sm:$0xff] %v2391_v0  ;;  %481 = vst [vmem:[%s2838_s12 + $0xd8] sm:$0xff] %v2391_v0 }
 0x108   : > { %482 = vst [vmem:[%s2838_s12 + $0xe0] sm:$0xff] %v2391_v0  ;;  %483 = vst [vmem:[%s2838_s12 + $0xe8] sm:$0xff] %v2391_v0 }
 0x109   : > { %484 = vst [vmem:[%s2838_s12 + $0xf0] sm:$0xff] %v2391_v0  ;;  %485 = vst [vmem:[%s2838_s12 + $0xf8] sm:$0xff] %v2391_v0 }
 0x10a PF: > { %s3367_s28 = sld [smem:[#allocation29_spill]]  ;;  %s3368_s1 = sld [smem:[#allocation28_spill]] }
 0x110   : > { %s486_s25 = sld [smem:[#allocation4 + %s3367_s28]] }
 0x116   : > { %p1660_p10 = scmp.ge.s32.totalorder %s3368_s1, %s486_s25 }
 0x117   : > { %v2014_v1 = vld [vmem:[%s2813_s11 + $0x40] sm:$0xff] (!%p1660_p10)   ;;  %v2016_v3 = vld [vmem:[%s2813_s11 + $0x48] sm:$0xff] (!%p1660_p10)   ;;  %v2018_v5 = vld [vmem:[%s2813_s11 + $0x50] sm:$0xff] (!%p1660_p10)  }
 0x118   : > { %490 = sbr.rel (%p1660_p10) target bundleno = 588 (0x24c), region = 64  ;;  %v2015_v2 = vld [vmem:[%s2813_s11] sm:$0xff] (!%p1660_p10)   ;;  %1720 = vmatprep.subr.bf16.mxu0 (!%p1660_p10), %v2014_v1  ;;  %1832 = vmatprep.subr.bf16.mxu1 (!%p1660_p10), %v2014_v1  ;;  %v2017_v4 = vld [vmem:[%s2813_s11 + $0x8] sm:$0xff] (!%p1660_p10)   ;;  %v2019_v6 = vld [vmem:[%s2813_s11 + $0x10] sm:$0xff] (!%p1660_p10)  }
 0x119   : > { %1721 = vmatpush3.bf16.msra.mxu0 (!%p1660_p10), %v2015_v2  ;;  %1840 = vmatpush3.bf16.msra.mxu1 (!%p1660_p10), %v2015_v2  ;;  %v2020_v7 = vld [vmem:[%s2813_s11 + $0x58] sm:$0xff] (!%p1660_p10)   ;;  %v2022_v9 = vld [vmem:[%s2813_s11 + $0x60] sm:$0xff] (!%p1660_p10)   ;;  %v2024_v11 = vld [vmem:[%s2813_s11 + $0x68] sm:$0xff] (!%p1660_p10)  }
 0x11a   : > { %1722 = vmatprep.subr.bf16.mxu0 (!%p1660_p10), %v2016_v3  ;;  %1833 = vmatprep.subr.bf16.mxu1 (!%p1660_p10), %v2016_v3  ;;  %v2021_v8 = vld [vmem:[%s2813_s11 + $0x18] sm:$0xff] (!%p1660_p10)   ;;  %v2023_v10 = vld [vmem:[%s2813_s11 + $0x20] sm:$0xff] (!%p1660_p10)   ;;  %v2025_v14 = vld [vmem:[%s2813_s11 + $0x28] sm:$0xff] (!%p1660_p10)  }
 0x11b   : > { %v2032_v12 = vld [vmem:[%s2805_s23 + $0x4] ss:$8 sps:$4 sm:$0xff] (!%p1660_p10)   ;;  %v2026_v15 = vld [vmem:[%s2813_s11 + $0x70] sm:$0xff] (!%p1660_p10)   ;;  %v2028_v17 = vld [vmem:[%s2813_s11 + $0x78] sm:$0xff] (!%p1660_p10)  }
 0x11c   : > { %v2035_v13 = vld [vmem:[%s2805_s23 + $0x84] ss:$8 sps:$4 sm:$0xff] (!%p1660_p10)   ;;  %875 = vmatprep.mubr.bf16.mxu0 (!%p1660_p10), %v2032_v12  ;;  %v2027_v16 = vld [vmem:[%s2813_s11 + $0x30] sm:$0xff] (!%p1660_p10)   ;;  %v2029_v18 = vld [vmem:[%s2813_s11 + $0x38] sm:$0xff] (!%p1660_p10)  }
 0x11d   : > { %1723 = vmatpush3.bf16.msra.mxu0 (!%p1660_p10), %v2017_v4  ;;  %1841 = vmatpush3.bf16.msra.mxu1 (!%p1660_p10), %v2017_v4  ;;  %v2030_v19 = vld [vmem:[%s2805_s23] ss:$8 sps:$4 sm:$0xff] (!%p1660_p10)   ;;  %v2036_v21 = vld [vmem:[%s2805_s23 + $0x14] ss:$8 sps:$4 sm:$0xff] (!%p1660_p10)   ;;  %v2040_v23 = vld [vmem:[%s2805_s23 + $0x10] ss:$8 sps:$4 sm:$0xff] (!%p1660_p10)  }
 0x11e   : > { %1724 = vmatprep.subr.bf16.mxu0 (!%p1660_p10), %v2018_v5  ;;  %1834 = vmatprep.subr.bf16.mxu1 (!%p1660_p10), %v2018_v5  ;;  %v2033_v20 = vld [vmem:[%s2805_s23 + $0x80] ss:$8 sps:$4 sm:$0xff] (!%p1660_p10)   ;;  %v2038_v22 = vld [vmem:[%s2805_s23 + $0x94] ss:$8 sps:$4 sm:$0xff] (!%p1660_p10)   ;;  %v2041_v24 = vld [vmem:[%s2805_s23 + $0x90] ss:$8 sps:$4 sm:$0xff] (!%p1660_p10)  }
 0x11f   : > { %939 = vmatprep.mubr.bf16.mxu1 %v2035_v13  ;;  %v2042_v25 = vld [vmem:[%s2805_s23 + $0x24] ss:$8 sps:$4 sm:$0xff]   ;;  %v2046_v27 = vld [vmem:[%s2805_s23 + $0x20] ss:$8 sps:$4 sm:$0xff]   ;;  %v2048_v29 = vld [vmem:[%s2805_s23 + $0x34] ss:$8 sps:$4 sm:$0xff]  }
 0x120   : > { %v2044_v26 = vld [vmem:[%s2805_s23 + $0xa4] ss:$8 sps:$4 sm:$0xff]   ;;  %v2047_v28 = vld [vmem:[%s2805_s23 + $0xa0] ss:$8 sps:$4 sm:$0xff]   ;;  %v2050_v30 = vld [vmem:[%s2805_s23 + $0xb4] ss:$8 sps:$4 sm:$0xff]  }
 0x121   : > { %1725 = vmatpush3.bf16.msra.mxu0 %v2019_v6  ;;  %1842 = vmatpush3.bf16.msra.mxu1 %v2019_v6  ;;  %v2052_v31 = vld [vmem:[%s2805_s23 + $0x30] ss:$8 sps:$4 sm:$0xff]   ;;  %v2054_v33 = vld [vmem:[%s2805_s23 + $0x44] ss:$8 sps:$4 sm:$0xff]   ;;  %v2058_v35 = vld [vmem:[%s2805_s23 + $0x40] ss:$8 sps:$4 sm:$0xff]  }
 0x122   : > { %1726 = vmatprep.subr.bf16.mxu0 %v2020_v7  ;;  %1835 = vmatprep.subr.bf16.mxu1 %v2020_v7  ;;  %v2053_v32 = vld [vmem:[%s2805_s23 + $0xb0] ss:$8 sps:$4 sm:$0xff]   ;;  %v2056_v34 = vld [vmem:[%s2805_s23 + $0xc4] ss:$8 sps:$4 sm:$0xff]   ;;  %v2059_v36 = vld [vmem:[%s2805_s23 + $0xc0] ss:$8 sps:$4 sm:$0xff]  }
 0x123   : > { %v2060_v37 = vld [vmem:[%s2805_s23 + $0x54] ss:$8 sps:$4 sm:$0xff]   ;;  %v2064_v39 = vld [vmem:[%s2805_s23 + $0x50] ss:$8 sps:$4 sm:$0xff]   ;;  %v2066_v41 = vld [vmem:[%s2805_s23 + $0x64] ss:$8 sps:$4 sm:$0xff]  }
 0x124   : > { %v2062_v38 = vld [vmem:[%s2805_s23 + $0xd4] ss:$8 sps:$4 sm:$0xff]   ;;  %v2065_v40 = vld [vmem:[%s2805_s23 + $0xd0] ss:$8 sps:$4 sm:$0xff]   ;;  %v2068_v42 = vld [vmem:[%s2805_s23 + $0xe4] ss:$8 sps:$4 sm:$0xff]  }
 0x125   : > { %1727 = vmatpush3.bf16.msra.mxu0 %v2021_v8  ;;  %1843 = vmatpush3.bf16.msra.mxu1 %v2021_v8  ;;  %v2070_v43 = vld [vmem:[%s2805_s23 + $0x60] ss:$8 sps:$4 sm:$0xff]   ;;  %v2072_v45 = vld [vmem:[%s2805_s23 + $0x74] ss:$8 sps:$4 sm:$0xff]   ;;  %v2076_v47 = vld [vmem:[%s2805_s23 + $0x70] ss:$8 sps:$4 sm:$0xff]  }
 0x126   : > { %1728 = vmatprep.subr.bf16.mxu0 %v2022_v9  ;;  %1836 = vmatprep.subr.bf16.mxu1 %v2022_v9  ;;  %v2071_v44 = vld [vmem:[%s2805_s23 + $0xe0] ss:$8 sps:$4 sm:$0xff]   ;;  %v2074_v46 = vld [vmem:[%s2805_s23 + $0xf4] ss:$8 sps:$4 sm:$0xff]   ;;  %v2077_v48 = vld [vmem:[%s2805_s23 + $0xf0] ss:$8 sps:$4 sm:$0xff]  }
 0x127   : > { %v491_v51 = vld [vmem:[%s2838_s12] sm:$0xff]  ;;  %v492_v59 = vld [vmem:[%s2838_s12 + $0x8] sm:$0xff]  ;;  %v493_v7 = vld [vmem:[%s2838_s12 + $0x10] sm:$0xff] }
 0x128   : > { %v507_v53 = vld [vmem:[%s2838_s12 + $0x80] sm:$0xff]  ;;  %v508_v61 = vld [vmem:[%s2838_s12 + $0x88] sm:$0xff]  ;;  %v509_v9 = vld [vmem:[%s2838_s12 + $0x90] sm:$0xff] }
 0x129   : > { %1729 = vmatpush3.bf16.msra.mxu0 %v2023_v10  ;;  %1844 = vmatpush3.bf16.msra.mxu1 %v2023_v10 }
 0x12a   : > { %1730 = vmatprep.subr.bf16.mxu0 %v2024_v11  ;;  %1837 = vmatprep.subr.bf16.mxu1 %v2024_v11 }
 0x12d   : > { %1731 = vmatpush3.bf16.msra.mxu0 %v2025_v14  ;;  %1845 = vmatpush3.bf16.msra.mxu1 %v2025_v14 }
 0x12e   : > { %1732 = vmatprep.subr.bf16.mxu0 %v2026_v15  ;;  %1838 = vmatprep.subr.bf16.mxu1 %v2026_v15  ;;  %v494_v15 = vld [vmem:[%s2838_s12 + $0x18] sm:$0xff] }
 0x131   : > { %1733 = vmatpush3.bf16.msra.mxu0 %v2027_v16  ;;  %1846 = vmatpush3.bf16.msra.mxu1 %v2027_v16 }
 0x132   : > { %1734 = vmatprep.subr.bf16.mxu0 %v2028_v17  ;;  %1839 = vmatprep.subr.bf16.mxu1 %v2028_v17  ;;  %v510_v17 = vld [vmem:[%s2838_s12 + $0x98] sm:$0xff] }
 0x135   : > { %1735 = vmatpush3.bf16.msra.mxu0 %v2029_v18  ;;  %1847 = vmatpush3.bf16.msra.mxu1 %v2029_v18 }
 0x138   : > { %876 = vmatmul.mubr.bf16.vlgmr.msra.gmra.mrb[0].mxu0 %v2030_v19  ;;  %940 = vmatmul.mubr.bf16.vlgmr.msra.gmra.mrb[0].mxu1 %v2033_v20 }
 0x139   : > { %883 = vmatprep.mubr.bf16.mxu0 %v2036_v21  ;;  %947 = vmatprep.mubr.bf16.mxu1 %v2038_v22 }
 0x140   : > { %884 = vmatmul.mubr.bf16.gmra.mrb[4].mxu0 %v2040_v23  ;;  %948 = vmatmul.mubr.bf16.gmra.mrb[4].mxu1 %v2041_v24 }
 0x141   : > { %891 = vmatprep.mubr.bf16.mxu0 %v2042_v25  ;;  %955 = vmatprep.mubr.bf16.mxu1 %v2044_v26 }
 0x148   : > { %892 = vmatmul.mubr.bf16.gmra.mrb[8].mxu0 %v2046_v27  ;;  %956 = vmatmul.mubr.bf16.gmra.mrb[8].mxu1 %v2047_v28  ;;  %v495_v27 = vld [vmem:[%s2838_s12 + $0x20] sm:$0xff] }
 0x149   : > { %899 = vmatprep.mubr.bf16.mxu0 %v2048_v29  ;;  %963 = vmatprep.mubr.bf16.mxu1 %v2050_v30  ;;  %v511_v29 = vld [vmem:[%s2838_s12 + $0xa0] sm:$0xff] }
 0x150   : > { %900 = vmatmul.mubr.bf16.gmra.mrb[12].mxu0 %v2052_v31  ;;  %964 = vmatmul.mubr.bf16.gmra.mrb[12].mxu1 %v2053_v32 }
 0x151   : > { %907 = vmatprep.mubr.bf16.mxu0 %v2054_v33  ;;  %971 = vmatprep.mubr.bf16.mxu1 %v2056_v34 }
 0x158   : > { %908 = vmatmul.mubr.bf16.gmra.mrb[16].mxu0 %v2058_v35  ;;  %972 = vmatmul.mubr.bf16.gmra.mrb[16].mxu1 %v2059_v36  ;;  %v496_v35 = vld [vmem:[%s2838_s12 + $0x28] sm:$0xff] }
 0x159   : > { %915 = vmatprep.mubr.bf16.mxu0 %v2060_v37  ;;  %979 = vmatprep.mubr.bf16.mxu1 %v2062_v38  ;;  %v512_v37 = vld [vmem:[%s2838_s12 + $0xa8] sm:$0xff] }
 0x160   : > { %916 = vmatmul.mubr.bf16.gmra.mrb[20].mxu0 %v2064_v39  ;;  %980 = vmatmul.mubr.bf16.gmra.mrb[20].mxu1 %v2065_v40 }
 0x161   : > { %923 = vmatprep.mubr.bf16.mxu0 %v2066_v41  ;;  %987 = vmatprep.mubr.bf16.mxu1 %v2068_v42 }
 0x168   : > { %924 = vmatmul.mubr.bf16.gmra.mrb[24].mxu0 %v2070_v43  ;;  %988 = vmatmul.mubr.bf16.gmra.mrb[24].mxu1 %v2071_v44 }
 0x169   : > { %931 = vmatprep.mubr.bf16.mxu0 %v2072_v45  ;;  %995 = vmatprep.mubr.bf16.mxu1 %v2074_v46 }
 0x170   : > { %932 = vmatmul.mubr.bf16.gmra.mrb[28].mxu0 %v2076_v47  ;;  %996 = vmatmul.mubr.bf16.gmra.mrb[28].mxu1 %v2077_v48  ;;  %v497_v47 = vld [vmem:[%s2838_s12 + $0x30] sm:$0xff] }
 0x20b   : > { %v1736_v49 = vpop.f32.mrb[0].mxu0  ;;  %v1784_v50 = vpop.f32.mrb[0].mxu1 }
 0x20c   : > { %v1737_v52 = vpop.f32.mrb[1].mxu0  ;;  %v1785_v54 = vpop.f32.mrb[1].mxu1 }
 0x20d   : > { %v1738_v55 = vadd.f32 %v1737_v52, %v1736_v49  ;;  %v1786_v56 = vadd.f32 %v1785_v54, %v1784_v50  ;;  %v1739_v57 = vpop.f32.mrb[2].mxu0  ;;  %v1787_v58 = vpop.f32.mrb[2].mxu1  ;;  %v513_v49 = vld [vmem:[%s2838_s12 + $0xb0] sm:$0xff] }
 0x20e   : > { %v1740_v60 = vpop.f32.mrb[3].mxu0  ;;  %v1788_v62 = vpop.f32.mrb[3].mxu1 }
 0x20f   : > { %v1004_v63 = vadd.f32 %v1738_v55, %v491_v51  ;;  %v1020_v0 = vadd.f32 %v1786_v56, %v507_v53  ;;  %v1741_v1 = vadd.f32 %v1740_v60, %v1739_v57  ;;  %v1789_v2 = vadd.f32 %v1788_v62, %v1787_v58  ;;  %v498_v55 = vld [vmem:[%s2838_s12 + $0x38] sm:$0xff] }
 0x210   : > { %v514_v57 = vld [vmem:[%s2838_s12 + $0xb8] sm:$0xff] }
 0x211   : > { %1036 = vst [vmem:[%s2838_s12] sm:$0xff] %v1004_v63  ;;  %1052 = vst [vmem:[%s2838_s12 + $0x80] sm:$0xff] %v1020_v0  ;;  %v1005_v3 = vadd.f32 %v1741_v1, %v492_v59  ;;  %v1021_v4 = vadd.f32 %v1789_v2, %v508_v61 }
 0x213   : > { %1037 = vst [vmem:[%s2838_s12 + $0x8] sm:$0xff] %v1005_v3  ;;  %1053 = vst [vmem:[%s2838_s12 + $0x88] sm:$0xff] %v1021_v4  ;;  %v1742_v5 = vpop.f32.mrb[4].mxu0  ;;  %v1790_v6 = vpop.f32.mrb[4].mxu1  ;;  %v499_v3 = vld [vmem:[%s2838_s12 + $0x40] sm:$0xff] }
 0x214   : > { %v1743_v8 = vpop.f32.mrb[5].mxu0  ;;  %v1791_v10 = vpop.f32.mrb[5].mxu1 }
 0x215   : > { %v1744_v11 = vadd.f32 %v1743_v8, %v1742_v5  ;;  %v1792_v12 = vadd.f32 %v1791_v10, %v1790_v6  ;;  %v1745_v13 = vpop.f32.mrb[6].mxu0  ;;  %v1793_v14 = vpop.f32.mrb[6].mxu1  ;;  %v515_v5 = vld [vmem:[%s2838_s12 + $0xc0] sm:$0xff] }
 0x216   : > { %v1746_v16 = vpop.f32.mrb[7].mxu0  ;;  %v1794_v18 = vpop.f32.mrb[7].mxu1 }
 0x217   : > { %v1006_v19 = vadd.f32 %v1744_v11, %v493_v7  ;;  %v1022_v20 = vadd.f32 %v1792_v12, %v509_v9  ;;  %v1747_v21 = vadd.f32 %v1746_v16, %v1745_v13  ;;  %v1795_v22 = vadd.f32 %v1794_v18, %v1793_v14  ;;  %v500_v11 = vld [vmem:[%s2838_s12 + $0x48] sm:$0xff] }
 0x218   : > { %v516_v13 = vld [vmem:[%s2838_s12 + $0xc8] sm:$0xff] }
 0x219   : > { %1038 = vst [vmem:[%s2838_s12 + $0x10] sm:$0xff] %v1006_v19  ;;  %1054 = vst [vmem:[%s2838_s12 + $0x90] sm:$0xff] %v1022_v20  ;;  %v1007_v23 = vadd.f32 %v1747_v21, %v494_v15  ;;  %v1023_v24 = vadd.f32 %v1795_v22, %v510_v17 }
 0x21b   : > { %1039 = vst [vmem:[%s2838_s12 + $0x18] sm:$0xff] %v1007_v23  ;;  %1055 = vst [vmem:[%s2838_s12 + $0x98] sm:$0xff] %v1023_v24  ;;  %v1748_v25 = vpop.f32.mrb[8].mxu0  ;;  %v1796_v26 = vpop.f32.mrb[8].mxu1  ;;  %v501_v23 = vld [vmem:[%s2838_s12 + $0x50] sm:$0xff] }
 0x21c   : > { %v1749_v28 = vpop.f32.mrb[9].mxu0  ;;  %v1797_v30 = vpop.f32.mrb[9].mxu1 }
 0x21d   : > { %v1750_v31 = vadd.f32 %v1749_v28, %v1748_v25  ;;  %v1798_v32 = vadd.f32 %v1797_v30, %v1796_v26  ;;  %v1751_v33 = vpop.f32.mrb[10].mxu0  ;;  %v1799_v34 = vpop.f32.mrb[10].mxu1  ;;  %v517_v25 = vld [vmem:[%s2838_s12 + $0xd0] sm:$0xff] }
 0x21e   : > { %v1752_v36 = vpop.f32.mrb[11].mxu0  ;;  %v1800_v38 = vpop.f32.mrb[11].mxu1 }
 0x21f   : > { %v1008_v39 = vadd.f32 %v1750_v31, %v495_v27  ;;  %v1024_v40 = vadd.f32 %v1798_v32, %v511_v29  ;;  %v1753_v41 = vadd.f32 %v1752_v36, %v1751_v33  ;;  %v1801_v42 = vadd.f32 %v1800_v38, %v1799_v34  ;;  %v502_v31 = vld [vmem:[%s2838_s12 + $0x58] sm:$0xff] }
 0x220   : > { %v518_v33 = vld [vmem:[%s2838_s12 + $0xd8] sm:$0xff] }
 0x221   : > { %1040 = vst [vmem:[%s2838_s12 + $0x20] sm:$0xff] %v1008_v39  ;;  %1056 = vst [vmem:[%s2838_s12 + $0xa0] sm:$0xff] %v1024_v40  ;;  %v1009_v43 = vadd.f32 %v1753_v41, %v496_v35  ;;  %v1025_v44 = vadd.f32 %v1801_v42, %v512_v37 }
 0x223   : > { %1041 = vst [vmem:[%s2838_s12 + $0x28] sm:$0xff] %v1009_v43  ;;  %1057 = vst [vmem:[%s2838_s12 + $0xa8] sm:$0xff] %v1025_v44  ;;  %v1754_v45 = vpop.f32.mrb[12].mxu0  ;;  %v1802_v46 = vpop.f32.mrb[12].mxu1  ;;  %v503_v43 = vld [vmem:[%s2838_s12 + $0x60] sm:$0xff] }
 0x224   : > { %v1755_v48 = vpop.f32.mrb[13].mxu0  ;;  %v1803_v50 = vpop.f32.mrb[13].mxu1 }
 0x225   : > { %v1756_v51 = vadd.f32 %v1755_v48, %v1754_v45  ;;  %v1804_v52 = vadd.f32 %v1803_v50, %v1802_v46  ;;  %v1757_v53 = vpop.f32.mrb[14].mxu0  ;;  %v1805_v54 = vpop.f32.mrb[14].mxu1  ;;  %v519_v45 = vld [vmem:[%s2838_s12 + $0xe0] sm:$0xff] }
 0x226   : > { %v1758_v56 = vpop.f32.mrb[15].mxu0  ;;  %v1806_v58 = vpop.f32.mrb[15].mxu1 }
 0x227   : > { %v1010_v59 = vadd.f32 %v1756_v51, %v497_v47  ;;  %v1026_v60 = vadd.f32 %v1804_v52, %v513_v49  ;;  %v1759_v61 = vadd.f32 %v1758_v56, %v1757_v53  ;;  %v1807_v62 = vadd.f32 %v1806_v58, %v1805_v54  ;;  %v504_v51 = vld [vmem:[%s2838_s12 + $0x68] sm:$0xff] }
 0x228   : > { %v520_v53 = vld [vmem:[%s2838_s12 + $0xe8] sm:$0xff] }
 0x229   : > { %1042 = vst [vmem:[%s2838_s12 + $0x30] sm:$0xff] %v1010_v59  ;;  %1058 = vst [vmem:[%s2838_s12 + $0xb0] sm:$0xff] %v1026_v60  ;;  %v1011_v63 = vadd.f32 %v1759_v61, %v498_v55  ;;  %v1027_v0 = vadd.f32 %v1807_v62, %v514_v57 }
 0x22b   : > { %1043 = vst [vmem:[%s2838_s12 + $0x38] sm:$0xff] %v1011_v63  ;;  %1059 = vst [vmem:[%s2838_s12 + $0xb8] sm:$0xff] %v1027_v0  ;;  %v1760_v1 = vpop.f32.mrb[16].mxu0  ;;  %v1808_v2 = vpop.f32.mrb[16].mxu1  ;;  %v505_v63 = vld [vmem:[%s2838_s12 + $0x70] sm:$0xff] }
 0x22c   : > { %v1761_v4 = vpop.f32.mrb[17].mxu0  ;;  %v1809_v6 = vpop.f32.mrb[17].mxu1 }
 0x22d   : > { %v1762_v7 = vadd.f32 %v1761_v4, %v1760_v1  ;;  %v1810_v8 = vadd.f32 %v1809_v6, %v1808_v2  ;;  %v1763_v9 = vpop.f32.mrb[18].mxu0  ;;  %v1811_v10 = vpop.f32.mrb[18].mxu1  ;;  %v521_v1 = vld [vmem:[%s2838_s12 + $0xf0] sm:$0xff] }
 0x22e   : > { %v1764_v12 = vpop.f32.mrb[19].mxu0  ;;  %v1812_v14 = vpop.f32.mrb[19].mxu1 }
 0x22f   : > { %v1012_v15 = vadd.f32 %v1762_v7, %v499_v3  ;;  %v1028_v16 = vadd.f32 %v1810_v8, %v515_v5  ;;  %v1765_v17 = vadd.f32 %v1764_v12, %v1763_v9  ;;  %v1813_v18 = vadd.f32 %v1812_v14, %v1811_v10  ;;  %v506_v7 = vld [vmem:[%s2838_s12 + $0x78] sm:$0xff] }
 0x230   : > { %v522_v9 = vld [vmem:[%s2838_s12 + $0xf8] sm:$0xff] }
 0x231   : > { %1044 = vst [vmem:[%s2838_s12 + $0x40] sm:$0xff] %v1012_v15  ;;  %1060 = vst [vmem:[%s2838_s12 + $0xc0] sm:$0xff] %v1028_v16  ;;  %v1013_v19 = vadd.f32 %v1765_v17, %v500_v11  ;;  %v1029_v20 = vadd.f32 %v1813_v18, %v516_v13 }
 0x233   : > { %1045 = vst [vmem:[%s2838_s12 + $0x48] sm:$0xff] %v1013_v19  ;;  %1061 = vst [vmem:[%s2838_s12 + $0xc8] sm:$0xff] %v1029_v20  ;;  %v1766_v21 = vpop.f32.mrb[20].mxu0  ;;  %v1814_v22 = vpop.f32.mrb[20].mxu1 }
 0x234   : > { %v1767_v24 = vpop.f32.mrb[21].mxu0  ;;  %v1815_v26 = vpop.f32.mrb[21].mxu1 }
 0x235   : > { %v1768_v27 = vadd.f32 %v1767_v24, %v1766_v21  ;;  %v1816_v28 = vadd.f32 %v1815_v26, %v1814_v22  ;;  %v1769_v29 = vpop.f32.mrb[22].mxu0  ;;  %v1817_v30 = vpop.f32.mrb[22].mxu1 }
 0x236   : > { %v1770_v32 = vpop.f32.mrb[23].mxu0  ;;  %v1818_v34 = vpop.f32.mrb[23].mxu1 }
 0x237   : > { %v1014_v35 = vadd.f32 %v1768_v27, %v501_v23  ;;  %v1030_v36 = vadd.f32 %v1816_v28, %v517_v25  ;;  %v1771_v37 = vadd.f32 %v1770_v32, %v1769_v29  ;;  %v1819_v38 = vadd.f32 %v1818_v34, %v1817_v30 }
 0x239   : > { %1046 = vst [vmem:[%s2838_s12 + $0x50] sm:$0xff] %v1014_v35  ;;  %1062 = vst [vmem:[%s2838_s12 + $0xd0] sm:$0xff] %v1030_v36  ;;  %v1015_v39 = vadd.f32 %v1771_v37, %v502_v31  ;;  %v1031_v40 = vadd.f32 %v1819_v38, %v518_v33 }
 0x23b   : > { %1047 = vst [vmem:[%s2838_s12 + $0x58] sm:$0xff] %v1015_v39  ;;  %1063 = vst [vmem:[%s2838_s12 + $0xd8] sm:$0xff] %v1031_v40  ;;  %v1772_v41 = vpop.f32.mrb[24].mxu0  ;;  %v1820_v42 = vpop.f32.mrb[24].mxu1 }
 0x23c   : > { %v1773_v44 = vpop.f32.mrb[25].mxu0  ;;  %v1821_v46 = vpop.f32.mrb[25].mxu1 }
 0x23d   : > { %v1774_v47 = vadd.f32 %v1773_v44, %v1772_v41  ;;  %v1822_v48 = vadd.f32 %v1821_v46, %v1820_v42  ;;  %v1775_v49 = vpop.f32.mrb[26].mxu0  ;;  %v1823_v50 = vpop.f32.mrb[26].mxu1 }
 0x23e   : > { %v1776_v52 = vpop.f32.mrb[27].mxu0  ;;  %v1824_v54 = vpop.f32.mrb[27].mxu1 }
 0x23f   : > { %v1016_v55 = vadd.f32 %v1774_v47, %v503_v43  ;;  %v1032_v56 = vadd.f32 %v1822_v48, %v519_v45  ;;  %v1777_v57 = vadd.f32 %v1776_v52, %v1775_v49  ;;  %v1825_v58 = vadd.f32 %v1824_v54, %v1823_v50 }
 0x241   : > { %1048 = vst [vmem:[%s2838_s12 + $0x60] sm:$0xff] %v1016_v55  ;;  %1064 = vst [vmem:[%s2838_s12 + $0xe0] sm:$0xff] %v1032_v56  ;;  %v1017_v59 = vadd.f32 %v1777_v57, %v504_v51  ;;  %v1033_v60 = vadd.f32 %v1825_v58, %v520_v53 }
 0x243   : > { %1049 = vst [vmem:[%s2838_s12 + $0x68] sm:$0xff] %v1017_v59  ;;  %1065 = vst [vmem:[%s2838_s12 + $0xe8] sm:$0xff] %v1033_v60  ;;  %v1778_v61 = vpop.f32.mrb[28].mxu0  ;;  %v1826_v62 = vpop.f32.mrb[28].mxu1 }
 0x244   : > { %v1779_v0 = vpop.f32.mrb[29].mxu0  ;;  %v1827_v2 = vpop.f32.mrb[29].mxu1 }
 0x245   : > { %v1780_v3 = vadd.f32 %v1779_v0, %v1778_v61  ;;  %v1828_v4 = vadd.f32 %v1827_v2, %v1826_v62  ;;  %v1781_v5 = vpop.f32.mrb[30].mxu0  ;;  %v1829_v6 = vpop.f32.mrb[30].mxu1 }
 0x246   : > { %v1782_v8 = vpop.f32.mrb[31].mxu0  ;;  %v1830_v10 = vpop.f32.mrb[31].mxu1 }
 0x247   : > { %v1018_v11 = vadd.f32 %v1780_v3, %v505_v63  ;;  %v1034_v12 = vadd.f32 %v1828_v4, %v521_v1  ;;  %v1783_v13 = vadd.f32 %v1782_v8, %v1781_v5  ;;  %v1831_v14 = vadd.f32 %v1830_v10, %v1829_v6 }
 0x249   : > { %1050 = vst [vmem:[%s2838_s12 + $0x70] sm:$0xff] %v1018_v11  ;;  %1066 = vst [vmem:[%s2838_s12 + $0xf0] sm:$0xff] %v1034_v12  ;;  %v1019_v15 = vadd.f32 %v1783_v13, %v506_v7  ;;  %v1035_v16 = vadd.f32 %v1831_v14, %v522_v9 }
 0x24b   : > { %1051 = vst [vmem:[%s2838_s12 + $0x78] sm:$0xff] %v1019_v15  ;;  %1067 = vst [vmem:[%s2838_s12 + $0xf8] sm:$0xff] %v1035_v16 }
 0x24c PF: > { %s3369_s10 = sld [smem:[#allocation28_spill]] }
 0x252   : > { %p1709_p13 = scmp.ne.s32.totalorder %s3369_s10, 2 }
 0x253   : > { %v1145_v17 = vld [vmem:[%s2836_s21 + $0x10] sm:$0xff] (!%p1709_p13)  ;;  %v1143_v18 = vld [vmem:[%s2836_s21] sm:$0xff] (!%p1709_p13)  ;;  %v1146_v19 = vld [vmem:[%s2836_s21 + $0x18] sm:$0xff] (!%p1709_p13)  ;;  %v2392_v20 = vmov (!%p1709_p13), 0  }
 0x254   : > { %1071 = sbr.rel (%p1709_p13) target bundleno = 789 (0x315), region = 68  ;;  %2079 = vset.pattern.permute.xlu1 (!%p1709_p13), %v2392_v20  ;;  %2078 = vset.pattern.permute.xlu0 (!%p1709_p13), %v2392_v20  ;;  %vm1177_vm0 = vcmp.gt.f32.partialorder (!%p1709_p13), %v1145_v17, 0.5  ;;  %vm1175_vm1 = vcmp.gt.f32.partialorder (!%p1709_p13), %v1143_v18, 0.5  ;;  %vm1178_vm2 = vcmp.gt.f32.partialorder (!%p1709_p13), %v1146_v19, 0.5  ;;  %v1144_v21 = vld [vmem:[%s2836_s21 + $0x8] sm:$0xff] (!%p1709_p13)  ;;  %v1147_v25 = vld [vmem:[%s2836_s21 + $0x20] sm:$0xff] (!%p1709_p13) }
 0x255   : > { %v1241_v22 = vsel (!%p1709_p13), %vm1177_vm0, 1, %v2392_v20  ;;  %v1239_v23 = vsel (!%p1709_p13), %vm1175_vm1, 1, %v2392_v20  ;;  %vm1176_vm3 = vcmp.gt.f32.partialorder (!%p1709_p13), %v1144_v21, 0.5  ;;  %v1148_v24 = vld [vmem:[%s2836_s21 + $0x28] sm:$0xff] (!%p1709_p13)  ;;  %v1242_v26 = vsel (!%p1709_p13), %vm1178_vm2, 1, %v2392_v20  ;;  %v1150_v28 = vld [vmem:[%s2836_s21 + $0x38] sm:$0xff] (!%p1709_p13) }
 0x256   : > { %1278 = vperm.xlu1 (!%p1709_p13), %2079, %v1241_v22   ;;  %1272 = vperm.xlu0 (!%p1709_p13), %2078, %v1239_v23   ;;  %v1240_v27 = vsel (!%p1709_p13), %vm1176_vm3, 1, %v2392_v20  ;;  %vm1180_vm4 = vcmp.gt.f32.partialorder (!%p1709_p13), %v1148_v24, 0.5  ;;  %vm1179_vm5 = vcmp.gt.f32.partialorder (!%p1709_p13), %v1147_v25, 0.5  ;;  %v1149_v29 = vld [vmem:[%s2836_s21 + $0x30] sm:$0xff] (!%p1709_p13)  ;;  %vm1182_vm6 = vcmp.gt.f32.partialorder (!%p1709_p13), %v1150_v28, 0.5  ;;  %v1152_v32 = vld [vmem:[%s2836_s21 + $0x48] sm:$0xff] (!%p1709_p13) }
 0x257   : > { %v1244_v30 = vsel (!%p1709_p13), %vm1180_vm4, 1, %v2392_v20  ;;  %v1243_v31 = vsel (!%p1709_p13), %vm1179_vm5, 1, %v2392_v20  ;;  %vm1181_vm7 = vcmp.gt.f32.partialorder (!%p1709_p13), %v1149_v29, 0.5  ;;  %v1151_v33 = vld [vmem:[%s2836_s21 + $0x40] sm:$0xff] (!%p1709_p13)  ;;  %v1246_v34 = vsel (!%p1709_p13), %vm1182_vm6, 1, %v2392_v20  ;;  %v1154_v36 = vld [vmem:[%s2836_s21 + $0x58] sm:$0xff] (!%p1709_p13) }
 0x258   : > { %v1245_v35 = vsel (!%p1709_p13), %vm1181_vm7, 1, %v2392_v20  ;;  %vm1184_vm8 = vcmp.gt.f32.partialorder (!%p1709_p13), %v1152_v32, 0.5  ;;  %vm1183_vm9 = vcmp.gt.f32.partialorder (!%p1709_p13), %v1151_v33, 0.5  ;;  %v1153_v37 = vld [vmem:[%s2836_s21 + $0x50] sm:$0xff] (!%p1709_p13)  ;;  %vm1186_vm10 = vcmp.gt.f32.partialorder (!%p1709_p13), %v1154_v36, 0.5  ;;  %v1156_v40 = vld [vmem:[%s2836_s21 + $0x68] sm:$0xff] (!%p1709_p13) }
 0x259   : > { %v1248_v38 = vsel (!%p1709_p13), %vm1184_vm8, 1, %v2392_v20  ;;  %v1247_v39 = vsel (!%p1709_p13), %vm1183_vm9, 1, %v2392_v20  ;;  %vm1185_vm11 = vcmp.gt.f32.partialorder (!%p1709_p13), %v1153_v37, 0.5  ;;  %v1155_v41 = vld [vmem:[%s2836_s21 + $0x60] sm:$0xff] (!%p1709_p13)  ;;  %v1250_v42 = vsel (!%p1709_p13), %vm1186_vm10, 1, %v2392_v20  ;;  %v1158_v44 = vld [vmem:[%s2836_s21 + $0x78] sm:$0xff] (!%p1709_p13) }
 0x25a   : > { %1281 = vperm.xlu1 (!%p1709_p13), %2079, %v1242_v26   ;;  %1275 = vperm.xlu0 (!%p1709_p13), %2078, %v1240_v27   ;;  %v1249_v43 = vsel (!%p1709_p13), %vm1185_vm11, 1, %v2392_v20  ;;  %vm1188_vm12 = vcmp.gt.f32.partialorder (!%p1709_p13), %v1156_v40, 0.5  ;;  %vm1187_vm13 = vcmp.gt.f32.partialorder (!%p1709_p13), %v1155_v41, 0.5  ;;  %v1157_v45 = vld [vmem:[%s2836_s21 + $0x70] sm:$0xff] (!%p1709_p13)  ;;  %vm1190_vm14 = vcmp.gt.f32.partialorder (!%p1709_p13), %v1158_v44, 0.5  ;;  %v1160_v48 = vld [vmem:[%s2836_s21 + $0x88] sm:$0xff] (!%p1709_p13) }
 0x25b   : > { %v1252_v46 = vsel %vm1188_vm12, 1, %v2392_v20  ;;  %v1251_v47 = vsel %vm1187_vm13, 1, %v2392_v20  ;;  %vm1189_vm15 = vcmp.gt.f32.partialorder %v1157_v45, 0.5  ;;  %v1159_v49 = vld [vmem:[%s2836_s21 + $0x80] sm:$0xff]  ;;  %v1254_v50 = vsel %vm1190_vm14, 1, %v2392_v20  ;;  %v1162_v52 = vld [vmem:[%s2836_s21 + $0x98] sm:$0xff] }
 0x25c   : > { %v1253_v51 = vsel %vm1189_vm15, 1, %v2392_v20  ;;  %vm1192_vm0 = vcmp.gt.f32.partialorder %v1160_v48, 0.5  ;;  %vm1191_vm1 = vcmp.gt.f32.partialorder %v1159_v49, 0.5  ;;  %v1161_v53 = vld [vmem:[%s2836_s21 + $0x90] sm:$0xff]  ;;  %vm1194_vm2 = vcmp.gt.f32.partialorder %v1162_v52, 0.5  ;;  %v1164_v56 = vld [vmem:[%s2836_s21 + $0xa8] sm:$0xff] }
 0x25d   : > { %v1256_v54 = vsel %vm1192_vm0, 1, %v2392_v20  ;;  %v1255_v55 = vsel %vm1191_vm1, 1, %v2392_v20  ;;  %vm1193_vm3 = vcmp.gt.f32.partialorder %v1161_v53, 0.5  ;;  %v1163_v57 = vld [vmem:[%s2836_s21 + $0xa0] sm:$0xff]  ;;  %v1258_v58 = vsel %vm1194_vm2, 1, %v2392_v20  ;;  %v1166_v60 = vld [vmem:[%s2836_s21 + $0xb8] sm:$0xff] }
 0x25e   : > { %1287 = vperm.xlu1 %2079, %v1244_v30   ;;  %1284 = vperm.xlu0 %2078, %v1243_v31   ;;  %v1257_v59 = vsel %vm1193_vm3, 1, %v2392_v20  ;;  %vm1196_vm4 = vcmp.gt.f32.partialorder %v1164_v56, 0.5  ;;  %vm1195_vm5 = vcmp.gt.f32.partialorder %v1163_v57, 0.5  ;;  %v1165_v61 = vld [vmem:[%s2836_s21 + $0xb0] sm:$0xff]  ;;  %vm1198_vm6 = vcmp.gt.f32.partialorder %v1166_v60, 0.5  ;;  %v1168_v0 = vld [vmem:[%s2836_s21 + $0xc8] sm:$0xff] }
 0x25f   : > { %v1260_v62 = vsel %vm1196_vm4, 1, %v2392_v20  ;;  %v1259_v63 = vsel %vm1195_vm5, 1, %v2392_v20  ;;  %vm1197_vm7 = vcmp.gt.f32.partialorder %v1165_v61, 0.5  ;;  %v1167_v1 = vld [vmem:[%s2836_s21 + $0xc0] sm:$0xff]  ;;  %v1262_v2 = vsel %vm1198_vm6, 1, %v2392_v20  ;;  %v1170_v4 = vld [vmem:[%s2836_s21 + $0xd8] sm:$0xff] }
 0x260   : > { %v1261_v3 = vsel %vm1197_vm7, 1, %v2392_v20  ;;  %vm1200_vm8 = vcmp.gt.f32.partialorder %v1168_v0, 0.5  ;;  %vm1199_vm9 = vcmp.gt.f32.partialorder %v1167_v1, 0.5  ;;  %v1169_v5 = vld [vmem:[%s2836_s21 + $0xd0] sm:$0xff]  ;;  %vm1202_vm10 = vcmp.gt.f32.partialorder %v1170_v4, 0.5  ;;  %v1172_v8 = vld [vmem:[%s2836_s21 + $0xe8] sm:$0xff] }
 0x261   : > { %v1264_v6 = vsel %vm1200_vm8, 1, %v2392_v20  ;;  %v1263_v7 = vsel %vm1199_vm9, 1, %v2392_v20  ;;  %vm1201_vm11 = vcmp.gt.f32.partialorder %v1169_v5, 0.5  ;;  %v1171_v9 = vld [vmem:[%s2836_s21 + $0xe0] sm:$0xff]  ;;  %v1266_v10 = vsel %vm1202_vm10, 1, %v2392_v20  ;;  %v1174_v12 = vld [vmem:[%s2836_s21 + $0xf8] sm:$0xff] }
 0x262   : > { %1293 = vperm.xlu1 %2079, %v1246_v34   ;;  %1290 = vperm.xlu0 %2078, %v1245_v35   ;;  %v1265_v11 = vsel %vm1201_vm11, 1, %v2392_v20  ;;  %vm1204_vm12 = vcmp.gt.f32.partialorder %v1172_v8, 0.5  ;;  %vm1203_vm13 = vcmp.gt.f32.partialorder %v1171_v9, 0.5  ;;  %v1173_v13 = vld [vmem:[%s2836_s21 + $0xf0] sm:$0xff]  ;;  %vm1206_vm14 = vcmp.gt.f32.partialorder %v1174_v12, 0.5  ;;  %v1072_v21 = vld [vmem:[%s2838_s12] sm:$0xff] }
 0x263   : > { %v1268_v14 = vsel %vm1204_vm12, 1, %v2392_v20  ;;  %v1267_v15 = vsel %vm1203_vm13, 1, %v2392_v20  ;;  %vm1205_vm15 = vcmp.gt.f32.partialorder %v1173_v13, 0.5  ;;  %v1270_v16 = vsel %vm1206_vm14, 1, %v2392_v20  ;;  %v1074_v18 = vld [vmem:[%s2838_s12 + $0x10] sm:$0xff]  ;;  %v1207_v25 = vld [vmem:[%s2822_s3] sm:$0xff] }
 0x264   : > { %v1269_v17 = vsel %vm1205_vm15, 1, %v2392_v20  ;;  %v3055_v19 = vld [vmem:[#allocation11] ss:$0 sm:$0xff]  ;;  %v1209_v22 = vld [vmem:[%s2822_s3 + $0x10] sm:$0xff]  ;;  %v1210_v31 = vld [vmem:[%s2822_s3 + $0x18] sm:$0xff] }
 0x265   : > { %v1113_v23 = vadd.f32 %v3055_v19, %v1074_v18  ;;  %v1111_v24 = vadd.f32 %v3055_v19, %v1072_v21  ;;  %v1075_v26 = vld [vmem:[%s2838_s12 + $0x18] sm:$0xff]  ;;  %v1073_v20 = vld [vmem:[%s2838_s12 + $0x8] sm:$0xff]  ;;  %v1076_v36 = vld [vmem:[%s2838_s12 + $0x20] sm:$0xff] }
 0x266   : > { %1299 = vperm.xlu1 %2079, %v1248_v38   ;;  %1296 = vperm.xlu0 %2078, %v1247_v39   ;;  %v1114_v32 = vadd.f32 %v3055_v19, %v1075_v26  ;;  %v1112_v33 = vadd.f32 %v3055_v19, %v1073_v20  ;;  %v1208_v34 = vld [vmem:[%s2822_s3 + $0x8] sm:$0xff]  ;;  %v1211_v44 = vld [vmem:[%s2822_s3 + $0x20] sm:$0xff] }
 0x267   : > { %v1077_v35 = vld [vmem:[%s2838_s12 + $0x28] sm:$0xff]  ;;  %v1079_v45 = vld [vmem:[%s2838_s12 + $0x38] sm:$0xff]  ;;  %v1080_v56 = vld [vmem:[%s2838_s12 + $0x40] sm:$0xff] }
 0x268   : > { %v1212_v41 = vld [vmem:[%s2822_s3 + $0x28] sm:$0xff]  ;;  %v1118_v52 = vadd.f32 %v3055_v19, %v1079_v45  ;;  %v1215_v0 = vld [vmem:[%s2822_s3 + $0x40] sm:$0xff] }
 0x269   : > { %v1216_v61 = vld [vmem:[%s2822_s3 + $0x48] sm:$0xff]  ;;  %v1083_v1 = vld [vmem:[%s2838_s12 + $0x58] sm:$0xff] }
 0x26a   : > { %1305 = vperm.xlu1 %2079, %v1250_v42   ;;  %1302 = vperm.xlu0 %2078, %v1249_v43   ;;  %v1116_v42 = vadd.f32 %v3055_v19, %v1077_v35  ;;  %v1115_v43 = vadd.f32 %v3055_v19, %v1076_v36  ;;  %v1122_v8 = vadd.f32 %v3055_v19, %v1083_v1  ;;  %v1084_v12 = vld [vmem:[%s2838_s12 + $0x60] sm:$0xff] }
 0x26b   : > { %v1123_v21 = vadd.f32 %v3055_v19, %v1084_v12 }
 0x26e   : > { %1311 = vperm.xlu1 %2079, %v1252_v46   ;;  %1308 = vperm.xlu0 %2078, %v1251_v47   ;;  %v1078_v46 = vld [vmem:[%s2838_s12 + $0x30] sm:$0xff] }
 0x26f   : > { %v1117_v53 = vadd.f32 %v3055_v19, %v1078_v46 }
 0x272   : > { %1317 = vperm.xlu1 %2079, %v1254_v50   ;;  %1314 = vperm.xlu0 %2078, %v1253_v51   ;;  %v1214_v51 = vld [vmem:[%s2822_s3 + $0x38] sm:$0xff] }
 0x276   : > { %1323 = vperm.xlu1 %2079, %v1256_v54   ;;  %1320 = vperm.xlu0 %2078, %v1255_v55   ;;  %v1213_v54 = vld [vmem:[%s2822_s3 + $0x30] sm:$0xff] }
 0x277   : > { %v1081_v55 = vld [vmem:[%s2838_s12 + $0x48] sm:$0xff] }
 0x27a   : > { %1329 = vperm.xlu1 %2079, %v1258_v58   ;;  %1326 = vperm.xlu0 %2078, %v1257_v59  }
 0x27e   : > { %1335 = vperm.xlu1 %2079, %v1260_v62   ;;  %1332 = vperm.xlu0 %2078, %v1259_v63   ;;  %v1120_v62 = vadd.f32 %v3055_v19, %v1081_v55  ;;  %v1119_v63 = vadd.f32 %v3055_v19, %v1080_v56 }
 0x282   : > { %1341 = vperm.xlu1 %2079, %v1262_v2   ;;  %1338 = vperm.xlu0 %2078, %v1261_v3   ;;  %v1082_v2 = vld [vmem:[%s2838_s12 + $0x50] sm:$0xff] }
 0x283   : > { %v1121_v9 = vadd.f32 %v3055_v19, %v1082_v2 }
 0x286   : > { %1347 = vperm.xlu1 %2079, %v1264_v6   ;;  %1344 = vperm.xlu0 %2078, %v1263_v7   ;;  %v1218_v7 = vld [vmem:[%s2822_s3 + $0x58] sm:$0xff] }
 0x28a   : > { %1353 = vperm.xlu1 %2079, %v1266_v10   ;;  %1350 = vperm.xlu0 %2078, %v1265_v11   ;;  %v1217_v10 = vld [vmem:[%s2822_s3 + $0x50] sm:$0xff] }
 0x28b   : > { %v1085_v11 = vld [vmem:[%s2838_s12 + $0x68] sm:$0xff] }
 0x28c   : > { %v1124_v18 = vadd.f32 %v3055_v19, %v1085_v11 }
 0x28e   : > { %1359 = vperm.xlu1 %2079, %v1268_v14   ;;  %1356 = vperm.xlu0 %2078, %v1267_v15  }
 0x292   : > { %1365 = vperm.xlu1 %2079, %v1270_v16   ;;  %1362 = vperm.xlu0 %2078, %v1269_v17   ;;  %v1220_v17 = vld [vmem:[%s2822_s3 + $0x68] sm:$0xff] }
 0x2d5   : > { %v1279_v27 = vpop.permute.xlu1 %1278  ;;  %v1273_v28 = vpop.permute.xlu0 %1272 }
 0x2d6   : > { %vm1369_vm0 = vcmp.eq.s32.totalorder %v1279_v27, 1  ;;  %vm1367_vm1 = vcmp.eq.s32.totalorder %v1273_v28, 1  ;;  %v1222_v28 = vld [vmem:[%s2822_s3 + $0x78] sm:$0xff] }
 0x2d7   : > { %v1401_v29 = vsel %vm1369_vm0, %v1113_v23, %v1209_v22  ;;  %v1399_v30 = vsel %vm1367_vm1, %v1111_v24, %v1207_v25  ;;  %v1219_v22 = vld [vmem:[%s2822_s3 + $0x60] sm:$0xff]  ;;  %v1086_v24 = vld [vmem:[%s2838_s12 + $0x70] sm:$0xff] }
 0x2d8   : > { %1433 = vst [vmem:[%s2838_s12 + $0x10] sm:$0xff] %v1401_v29  ;;  %1431 = vst [vmem:[%s2838_s12] sm:$0xff] %v1399_v30  ;;  %v1087_v23 = vld [vmem:[%s2838_s12 + $0x78] sm:$0xff]  ;;  %v1125_v30 = vadd.f32 %v3055_v19, %v1086_v24 }
 0x2d9   : > { %v1282_v37 = vpop.permute.xlu1 %1281  ;;  %v1276_v38 = vpop.permute.xlu0 %1275  ;;  %v1126_v29 = vadd.f32 %v3055_v19, %v1087_v23 }
 0x2da   : > { %vm1370_vm2 = vcmp.eq.s32.totalorder %v1282_v37, 1  ;;  %vm1368_vm3 = vcmp.eq.s32.totalorder %v1276_v38, 1  ;;  %v1224_v38 = vld [vmem:[%s2822_s3 + $0x88] sm:$0xff] }
 0x2db   : > { %v1402_v39 = vsel %vm1370_vm2, %v1114_v32, %v1210_v31  ;;  %v1400_v40 = vsel %vm1368_vm3, %v1112_v33, %v1208_v34  ;;  %v1221_v31 = vld [vmem:[%s2822_s3 + $0x70] sm:$0xff]  ;;  %v1088_v33 = vld [vmem:[%s2838_s12 + $0x80] sm:$0xff] }
 0x2dc   : > { %1434 = vst [vmem:[%s2838_s12 + $0x18] sm:$0xff] %v1402_v39  ;;  %1432 = vst [vmem:[%s2838_s12 + $0x8] sm:$0xff] %v1400_v40  ;;  %v1089_v32 = vld [vmem:[%s2838_s12 + $0x88] sm:$0xff]  ;;  %v1127_v40 = vadd.f32 %v3055_v19, %v1088_v33 }
 0x2dd   : > { %v1288_v47 = vpop.permute.xlu1 %1287  ;;  %v1285_v48 = vpop.permute.xlu0 %1284  ;;  %v1128_v39 = vadd.f32 %v3055_v19, %v1089_v32 }
 0x2de   : > { %vm1372_vm4 = vcmp.eq.s32.totalorder %v1288_v47, 1  ;;  %vm1371_vm5 = vcmp.eq.s32.totalorder %v1285_v48, 1  ;;  %v1226_v48 = vld [vmem:[%s2822_s3 + $0x98] sm:$0xff] }
 0x2df   : > { %v1404_v49 = vsel %vm1372_vm4, %v1116_v42, %v1212_v41  ;;  %v1403_v50 = vsel %vm1371_vm5, %v1115_v43, %v1211_v44  ;;  %v1223_v41 = vld [vmem:[%s2822_s3 + $0x80] sm:$0xff]  ;;  %v1090_v43 = vld [vmem:[%s2838_s12 + $0x90] sm:$0xff] }
 0x2e0   : > { %1436 = vst [vmem:[%s2838_s12 + $0x28] sm:$0xff] %v1404_v49  ;;  %1435 = vst [vmem:[%s2838_s12 + $0x20] sm:$0xff] %v1403_v50  ;;  %v1091_v42 = vld [vmem:[%s2838_s12 + $0x98] sm:$0xff]  ;;  %v1129_v50 = vadd.f32 %v3055_v19, %v1090_v43 }
 0x2e1   : > { %v1294_v57 = vpop.permute.xlu1 %1293  ;;  %v1291_v58 = vpop.permute.xlu0 %1290  ;;  %v1130_v49 = vadd.f32 %v3055_v19, %v1091_v42 }
 0x2e2   : > { %vm1374_vm6 = vcmp.eq.s32.totalorder %v1294_v57, 1  ;;  %vm1373_vm7 = vcmp.eq.s32.totalorder %v1291_v58, 1  ;;  %v1228_v58 = vld [vmem:[%s2822_s3 + $0xa8] sm:$0xff] }
 0x2e3   : > { %v1406_v59 = vsel %vm1374_vm6, %v1118_v52, %v1214_v51  ;;  %v1405_v60 = vsel %vm1373_vm7, %v1117_v53, %v1213_v54  ;;  %v1225_v51 = vld [vmem:[%s2822_s3 + $0x90] sm:$0xff]  ;;  %v1092_v53 = vld [vmem:[%s2838_s12 + $0xa0] sm:$0xff] }
 0x2e4   : > { %1438 = vst [vmem:[%s2838_s12 + $0x38] sm:$0xff] %v1406_v59  ;;  %1437 = vst [vmem:[%s2838_s12 + $0x30] sm:$0xff] %v1405_v60  ;;  %v1093_v52 = vld [vmem:[%s2838_s12 + $0xa8] sm:$0xff]  ;;  %v1131_v60 = vadd.f32 %v3055_v19, %v1092_v53 }
 0x2e5   : > { %v1300_v3 = vpop.permute.xlu1 %1299  ;;  %v1297_v4 = vpop.permute.xlu0 %1296  ;;  %v1132_v59 = vadd.f32 %v3055_v19, %v1093_v52 }
 0x2e6   : > { %vm1376_vm8 = vcmp.eq.s32.totalorder %v1300_v3, 1  ;;  %vm1375_vm9 = vcmp.eq.s32.totalorder %v1297_v4, 1  ;;  %v1230_v4 = vld [vmem:[%s2822_s3 + $0xb8] sm:$0xff] }
 0x2e7   : > { %v1408_v5 = vsel %vm1376_vm8, %v1120_v62, %v1216_v61  ;;  %v1407_v6 = vsel %vm1375_vm9, %v1119_v63, %v1215_v0  ;;  %v1227_v61 = vld [vmem:[%s2822_s3 + $0xa0] sm:$0xff]  ;;  %v1094_v63 = vld [vmem:[%s2838_s12 + $0xb0] sm:$0xff] }
 0x2e8   : > { %1440 = vst [vmem:[%s2838_s12 + $0x48] sm:$0xff] %v1408_v5  ;;  %1439 = vst [vmem:[%s2838_s12 + $0x40] sm:$0xff] %v1407_v6  ;;  %v1095_v62 = vld [vmem:[%s2838_s12 + $0xb8] sm:$0xff]  ;;  %v1133_v6 = vadd.f32 %v3055_v19, %v1094_v63 }
 0x2e9   : > { %v1306_v13 = vpop.permute.xlu1 %1305  ;;  %v1303_v14 = vpop.permute.xlu0 %1302  ;;  %v1134_v5 = vadd.f32 %v3055_v19, %v1095_v62 }
 0x2ea   : > { %vm1378_vm10 = vcmp.eq.s32.totalorder %v1306_v13, 1  ;;  %vm1377_vm11 = vcmp.eq.s32.totalorder %v1303_v14, 1  ;;  %v1232_v14 = vld [vmem:[%s2822_s3 + $0xc8] sm:$0xff] }
 0x2eb   : > { %v1410_v15 = vsel %vm1378_vm10, %v1122_v8, %v1218_v7  ;;  %v1409_v16 = vsel %vm1377_vm11, %v1121_v9, %v1217_v10  ;;  %v1229_v7 = vld [vmem:[%s2822_s3 + $0xb0] sm:$0xff]  ;;  %v1096_v9 = vld [vmem:[%s2838_s12 + $0xc0] sm:$0xff] }
 0x2ec   : > { %1442 = vst [vmem:[%s2838_s12 + $0x58] sm:$0xff] %v1410_v15  ;;  %1441 = vst [vmem:[%s2838_s12 + $0x50] sm:$0xff] %v1409_v16  ;;  %v1097_v8 = vld [vmem:[%s2838_s12 + $0xc8] sm:$0xff]  ;;  %v1135_v16 = vadd.f32 %v3055_v19, %v1096_v9 }
 0x2ed   : > { %v1312_v25 = vpop.permute.xlu1 %1311  ;;  %v1309_v26 = vpop.permute.xlu0 %1308  ;;  %v1136_v15 = vadd.f32 %v3055_v19, %v1097_v8 }
 0x2ee   : > { %vm1380_vm12 = vcmp.eq.s32.totalorder %v1312_v25, 1  ;;  %vm1379_vm13 = vcmp.eq.s32.totalorder %v1309_v26, 1  ;;  %v1234_v26 = vld [vmem:[%s2822_s3 + $0xd8] sm:$0xff] }
 0x2ef   : > { %v1412_v20 = vsel %vm1380_vm12, %v1124_v18, %v1220_v17  ;;  %v1411_v27 = vsel %vm1379_vm13, %v1123_v21, %v1219_v22  ;;  %v1231_v17 = vld [vmem:[%s2822_s3 + $0xc0] sm:$0xff]  ;;  %v1098_v21 = vld [vmem:[%s2838_s12 + $0xd0] sm:$0xff] }
 0x2f0   : > { %1444 = vst [vmem:[%s2838_s12 + $0x68] sm:$0xff] %v1412_v20  ;;  %1443 = vst [vmem:[%s2838_s12 + $0x60] sm:$0xff] %v1411_v27  ;;  %v1099_v18 = vld [vmem:[%s2838_s12 + $0xd8] sm:$0xff]  ;;  %v1137_v27 = vadd.f32 %v3055_v19, %v1098_v21 }
 0x2f1   : > { %v1318_v34 = vpop.permute.xlu1 %1317  ;;  %v1315_v35 = vpop.permute.xlu0 %1314  ;;  %v1138_v20 = vadd.f32 %v3055_v19, %v1099_v18 }
 0x2f2   : > { %vm1382_vm14 = vcmp.eq.s32.totalorder %v1318_v34, 1  ;;  %vm1381_vm15 = vcmp.eq.s32.totalorder %v1315_v35, 1  ;;  %v1236_v35 = vld [vmem:[%s2822_s3 + $0xe8] sm:$0xff] }
 0x2f3   : > { %v1414_v36 = vsel %vm1382_vm14, %v1126_v29, %v1222_v28  ;;  %v1413_v37 = vsel %vm1381_vm15, %v1125_v30, %v1221_v31  ;;  %v1233_v28 = vld [vmem:[%s2822_s3 + $0xd0] sm:$0xff]  ;;  %v1100_v30 = vld [vmem:[%s2838_s12 + $0xe0] sm:$0xff] }
 0x2f4   : > { %1446 = vst [vmem:[%s2838_s12 + $0x78] sm:$0xff] %v1414_v36  ;;  %1445 = vst [vmem:[%s2838_s12 + $0x70] sm:$0xff] %v1413_v37  ;;  %v1101_v29 = vld [vmem:[%s2838_s12 + $0xe8] sm:$0xff]  ;;  %v1139_v37 = vadd.f32 %v3055_v19, %v1100_v30 }
 0x2f5   : > { %v1324_v44 = vpop.permute.xlu1 %1323  ;;  %v1321_v45 = vpop.permute.xlu0 %1320  ;;  %v1140_v36 = vadd.f32 %v3055_v19, %v1101_v29 }
 0x2f6   : > { %vm1384_vm0 = vcmp.eq.s32.totalorder %v1324_v44, 1  ;;  %vm1383_vm1 = vcmp.eq.s32.totalorder %v1321_v45, 1 }
 0x2f7   : > { %v1416_v46 = vsel %vm1384_vm0, %v1128_v39, %v1224_v38  ;;  %v1415_v47 = vsel %vm1383_vm1, %v1127_v40, %v1223_v41  ;;  %v1235_v38 = vld [vmem:[%s2822_s3 + $0xe0] sm:$0xff]  ;;  %v1102_v40 = vld [vmem:[%s2838_s12 + $0xf0] sm:$0xff] }
 0x2f8   : > { %1448 = vst [vmem:[%s2838_s12 + $0x88] sm:$0xff] %v1416_v46  ;;  %1447 = vst [vmem:[%s2838_s12 + $0x80] sm:$0xff] %v1415_v47  ;;  %v1103_v39 = vld [vmem:[%s2838_s12 + $0xf8] sm:$0xff]  ;;  %v1141_v46 = vadd.f32 %v3055_v19, %v1102_v40 }
 0x2f9   : > { %v1330_v54 = vpop.permute.xlu1 %1329  ;;  %v1327_v55 = vpop.permute.xlu0 %1326  ;;  %v1142_v45 = vadd.f32 %v3055_v19, %v1103_v39  ;;  %v1238_v47 = vld [vmem:[%s2822_s3 + $0xf8] sm:$0xff] }
 0x2fa   : > { %vm1386_vm2 = vcmp.eq.s32.totalorder %v1330_v54, 1  ;;  %vm1385_vm3 = vcmp.eq.s32.totalorder %v1327_v55, 1 }
 0x2fb   : > { %v1418_v56 = vsel %vm1386_vm2, %v1130_v49, %v1226_v48  ;;  %v1417_v57 = vsel %vm1385_vm3, %v1129_v50, %v1225_v51  ;;  %v1237_v48 = vld [vmem:[%s2822_s3 + $0xf0] sm:$0xff] }
 0x2fc   : > { %1450 = vst [vmem:[%s2838_s12 + $0x98] sm:$0xff] %v1418_v56  ;;  %1449 = vst [vmem:[%s2838_s12 + $0x90] sm:$0xff] %v1417_v57 }
 0x2fd   : > { %v1336_v0 = vpop.permute.xlu1 %1335  ;;  %v1333_v1 = vpop.permute.xlu0 %1332 }
 0x2fe   : > { %vm1388_vm4 = vcmp.eq.s32.totalorder %v1336_v0, 1  ;;  %vm1387_vm5 = vcmp.eq.s32.totalorder %v1333_v1, 1 }
 0x2ff   : > { %v1420_v2 = vsel %vm1388_vm4, %v1132_v59, %v1228_v58  ;;  %v1419_v3 = vsel %vm1387_vm5, %v1131_v60, %v1227_v61 }
 0x300   : > { %1452 = vst [vmem:[%s2838_s12 + $0xa8] sm:$0xff] %v1420_v2  ;;  %1451 = vst [vmem:[%s2838_s12 + $0xa0] sm:$0xff] %v1419_v3 }
 0x301   : > { %v1342_v10 = vpop.permute.xlu1 %1341  ;;  %v1339_v11 = vpop.permute.xlu0 %1338 }
 0x302   : > { %vm1390_vm6 = vcmp.eq.s32.totalorder %v1342_v10, 1  ;;  %vm1389_vm7 = vcmp.eq.s32.totalorder %v1339_v11, 1 }
 0x303   : > { %v1422_v12 = vsel %vm1390_vm6, %v1134_v5, %v1230_v4  ;;  %v1421_v13 = vsel %vm1389_vm7, %v1133_v6, %v1229_v7 }
 0x304   : > { %1454 = vst [vmem:[%s2838_s12 + $0xb8] sm:$0xff] %v1422_v12  ;;  %1453 = vst [vmem:[%s2838_s12 + $0xb0] sm:$0xff] %v1421_v13 }
 0x305   : > { %v1348_v22 = vpop.permute.xlu1 %1347  ;;  %v1345_v23 = vpop.permute.xlu0 %1344 }
 0x306   : > { %vm1392_vm8 = vcmp.eq.s32.totalorder %v1348_v22, 1  ;;  %vm1391_vm9 = vcmp.eq.s32.totalorder %v1345_v23, 1 }
 0x307   : > { %v1424_v24 = vsel %vm1392_vm8, %v1136_v15, %v1232_v14  ;;  %v1423_v25 = vsel %vm1391_vm9, %v1135_v16, %v1231_v17 }
 0x308   : > { %1456 = vst [vmem:[%s2838_s12 + $0xc8] sm:$0xff] %v1424_v24  ;;  %1455 = vst [vmem:[%s2838_s12 + $0xc0] sm:$0xff] %v1423_v25 }
 0x309   : > { %v1354_v31 = vpop.permute.xlu1 %1353  ;;  %v1351_v32 = vpop.permute.xlu0 %1350 }
 0x30a   : > { %vm1394_vm10 = vcmp.eq.s32.totalorder %v1354_v31, 1  ;;  %vm1393_vm11 = vcmp.eq.s32.totalorder %v1351_v32, 1 }
 0x30b   : > { %v1426_v33 = vsel %vm1394_vm10, %v1138_v20, %v1234_v26  ;;  %v1425_v34 = vsel %vm1393_vm11, %v1137_v27, %v1233_v28 }
 0x30c   : > { %1458 = vst [vmem:[%s2838_s12 + $0xd8] sm:$0xff] %v1426_v33  ;;  %1457 = vst [vmem:[%s2838_s12 + $0xd0] sm:$0xff] %v1425_v34 }
 0x30d   : > { %v1360_v41 = vpop.permute.xlu1 %1359  ;;  %v1357_v42 = vpop.permute.xlu0 %1356 }
 0x30e   : > { %vm1396_vm12 = vcmp.eq.s32.totalorder %v1360_v41, 1  ;;  %vm1395_vm13 = vcmp.eq.s32.totalorder %v1357_v42, 1 }
 0x30f   : > { %v1428_v43 = vsel %vm1396_vm12, %v1140_v36, %v1236_v35  ;;  %v1427_v44 = vsel %vm1395_vm13, %v1139_v37, %v1235_v38 }
 0x310   : > { %1460 = vst [vmem:[%s2838_s12 + $0xe8] sm:$0xff] %v1428_v43  ;;  %1459 = vst [vmem:[%s2838_s12 + $0xe0] sm:$0xff] %v1427_v44 }
 0x311   : > { %v1366_v49 = vpop.permute.xlu1 %1365  ;;  %v1363_v50 = vpop.permute.xlu0 %1362 }
 0x312   : > { %vm1398_vm14 = vcmp.eq.s32.totalorder %v1366_v49, 1  ;;  %vm1397_vm15 = vcmp.eq.s32.totalorder %v1363_v50, 1 }
 0x313   : > { %v1430_v51 = vsel %vm1398_vm14, %v1142_v45, %v1238_v47  ;;  %v1429_v52 = vsel %vm1397_vm15, %v1141_v46, %v1237_v48 }
 0x314   : > { %1462 = vst [vmem:[%s2838_s12 + $0xf8] sm:$0xff] %v1430_v51  ;;  %1461 = vst [vmem:[%s2838_s12 + $0xf0] sm:$0xff] %v1429_v52 }
 0x315 PF: > { %s3370_s20 = sld [smem:[#allocation29_spill]]  ;;  %s3372_s19 = sld [smem:[#allocation37_spill]] }
 0x316   : > { %s3373_s11 = sld [smem:[#allocation45_spill]]  ;;  %s1477_s17 = sshll.u32 %s2838_s12, 4  ;;  %s3191_s17 = int_to_ptr.vmem [resolvable:$true] %s1477_s17 }
 0x317   : > { %s3195_s29 = scalar_lea.sflag [#allocation7], %s374_s18  ;;  %s2218_s3 = scalar_lea.vmem %s3191_s17, 4096 }
 0x318   : > { %p2219_p4 = scmp.ne.s32.totalorder %s3191_s17, %s2218_s3  ;;  %s2393_s30 = smov [#allocation13]  }
 0x319   : > { %s2222_s2 = sshll.u32 %s2393_s30, 4  ;;  %s2223_s2 = int_to_ptr.vmem [resolvable:$false] %s2222_s2 }
 0x31a   : > { %s2224_s27 = scalar_lea.vmem %s2223_s2, 8192  ;;  %p2225_p11 = scmp.lt.s32.totalorder %s3191_s17, %s2223_s2 }
 0x31b   : > { %s1719_s6 = sshll.u32 %s3370_s20, 12  ;;  %p3374_p1 = scmp.ne.s32.totalorder %s3372_s19, 0 }
 0x31c   : > { %s3188_s13 = scalar_lea.hbm %s3373_s11, %s1719_s6  ;;  %p2226_p9 = scmp.lt.s32.totalorder %s2224_s27, %s2218_s3 }
 0x31d   : > { %p2220_p12 = pnand %p2219_p4, %p3374_p1 }
 0x31e   : > { %p2227_p7 = por %p2226_p9, %p2225_p11 }
 0x31f   : > { %p2221_p5 = pneg %p2220_p12 }
 0x321   : > { %p2228_p6 = pnand %p2227_p7, %p2221_p5 }
 0x323   : > { %2231 = shalt.err (!%p2228_p6)
}
 0x324   : > { %s2232_s18 = scalar_lea.hbm %s3188_s13, 4096  ;;  %s2236_s14 = scalar_lea.hbm %s3373_s11, 16384 }
 0x325   : > { %p2233_p2 = scmp.ne.s32.totalorder %s3188_s13, %s2232_s18  ;;  %p2237_p3 = scmp.lt.u32.totalorder %s3188_s13, %s3373_s11 }
 0x326   : > { %p2238_p10 = scmp.lt.u32.totalorder %s2236_s14, %s2232_s18  ;;  %p2240_p4 = scmp.lt.u32.totalorder %s2232_s18, %s3188_s13 }
 0x327   : > { %p2234_p0 = pnand %p2233_p2, %p3374_p1 }
 0x328   : > { %p2239_p13 = por %p2238_p10, %p2237_p3 }
 0x329   : > { %p2235_p8 = pneg %p2234_p0 }
 0x32a   : > { %p2241_p12 = por %p2240_p4, %p2239_p13 }
 0x32c   : > { %p2242_p5 = pnand %p2241_p12, %p2235_p8 }
 0x32e   : > { %2245 = shalt.err (!%p2242_p5)
}
 0x32f   : > { %s2394_s7 = smov 128   ;;  %s2395_s28 = smov 8  }
 0x330   : > { %1862 = dma.vmem_to_hbm [thread:$0]  (%p3374_p1), %s3191_s17, 4096, %s3188_s13, %s3195_s29, %s2394_s7, %s2394_s7, %s2395_s28  }
 0x331 PF: > { %s3375_s25 = sld [smem:[#allocation31_spill]]  ;;  %s3376_s1 = sld [smem:[#allocation24_spill]] }
 0x332   : > { %s3377_s10 = sld [smem:[#allocation38_spill]] }
 0x337   : > { %p1889_p11 = scmp.ge.s32.totalorder %s3375_s25, 2  ;;  %s1492_s20 = sand.u32 1, %s3376_s1  }
 0x338   : > { %p3378_p9 = scmp.ne.s32.totalorder %s3377_s10, 0  ;;  %s1493_s23 = scalar_lea.sflag [#allocation7], %s1492_s20 }
 0x33a   : > { %p1883_p7 = pnand %p1889_p11, %p3378_p9 }
 0x33c   : > { %2321 = dma.done.wait (!%p1883_p7), %s1493_s23, 4096  }
 0x33d   : > { %2323 = vsyncadd (!%p1883_p7), %s1493_s23, 4294963200  ;;  %s33_s9 = sadd.s32 1, %s3375_s25   ;;  %s3380_s0 = sld [smem:[#allocation25_spill]] }
 0x33e   : > { %p3224_p6 = scmp.ge.s32.totalorder %s33_s9, 14   ;;  %s3381_s19 = sld [smem:[#allocation36_spill]] }
 0x33f   : > { %s3382_s15 = sld [smem:[#allocation26_spill]]  ;;  %s3383_s1 = sld [smem:[#allocation35_spill]] }
 0x340   : > { %s3384_s13 = sld [smem:[#allocation27_spill]]  ;;  %s3385_s27 = sld [smem:[#allocation39_spill]] }
 0x341   : > { %s3386_s28 = sld [smem:[#allocation30_spill]]  ;;  %s3387_s30 = sld [smem:[#allocation32_spill]] }
 0x342   : > { %s3388_s17 = sld [smem:[#allocation34_spill]]  ;;  %s3389_s21 = smov %s2334_s22 }
 0x343   : > { %s3391_s23 = smov %s2342_s24  ;;  %s3393_s25 = smov %s2354_s26 }
 0x344   : > { %s3390_s22 = smov %s3381_s19  ;;  %s3395_s29 = smov %s2374_s8 }
 0x345   : > { %s3392_s24 = smov %s3382_s15  ;;  %32 = sbr.rel (!%p3224_p6) target bundleno = 33 (0x21), region = 128 }
 0x346   : > { %s3394_s26 = smov %s3384_s13 }
 0x348   : > { %s3396_s8 = smov %s3388_s17 }
 0x34c   :  { %1498 = vsyncpa [#allocation6], 1 }
 0x34d   :  { %1500 = vsyncpa [#allocation6 + $0x1], 1 }
 0x34e   :  { %1501 = vsyncpa [#allocation9], 1 }
 0x34f   :  { %1503 = vsyncpa [#allocation9 + $0x1], 1 }
 0x350   :  { %1504 = vsyncpa [#allocation12], 1 }
 0x351   :  { %1505 = vsyncpa [#allocation7], 1 }
 0x352   :  { %1507 = vsyncpa [#allocation7 + $0x1], 1 }

</bundles_post_ra>
